<compile_context>
chip_gen: v5e
topology: v5e:2x2
jax: 0.10.0
libtpu: 0.0.40
codegen_flags: <defaults>
</compile_context>

<pallas_src>
import functools

import jax
import jax.numpy as jnp
import numpy as np
from jax.experimental import pallas as pl
from jax.experimental.pallas import tpu as pltpu

EPS = 1e-5  # nn.InstanceNorm2d default


def _residual_block_kernel(x_ref, w_ref, o_ref, *, width):
    """x_ref/o_ref: (BN, C, H*W);  w_ref: (2*9, Cin, Cout, 1);  width = W."""
    BN, C, HW = x_ref.shape
    W = width

    # Flattened-position masks for the reflection-padding boundary fixups.
    # Hoisted: computed once, reused by both convolutions and all BN samples.
    p = jax.lax.broadcasted_iota(jnp.int32, (C, HW), 1)
    col = p % W
    is_row0 = p < W            # y == 0
    is_rowL = p >= HW - W      # y == H-1
    is_col0 = col == 0         # x == 0
    is_colL = col == W - 1     # x == W-1

    def roll(a, s):
        # roll(a, s)[p] == a[(p - s) mod HW]; axis=1 never mixes channels.
        return pltpu.roll(a, shift=s % HW, axis=1)

    def tree_sum(xs):
        # Balanced pairwise reduction -> short, parallel add chains.
        while len(xs) > 1:
            nxt = [xs[i] + xs[i + 1] for i in range(0, len(xs) - 1, 2)]
            if len(xs) % 2:
                nxt.append(xs[-1])
            xs = nxt
        return xs[0]

    def conv3x3(a, base):
        # 3x3 conv with reflection pad 1, as a VPU stencil on the (C, HW) slab.
        up = roll(a, W)      # a[p - W]  == row above   (generic case)
        dn = roll(a, -W)     # a[p + W]  == row below   (generic case)
        v_slabs = (
            jnp.where(is_row0, dn, up),   # oy = -1 : row -1 reflects to row 1
            a,                            # oy =  0
            jnp.where(is_rowL, up, dn),   # oy = +1 : row H reflects to row H-2
        )
        # One accumulator per input channel -> C independent add chains (ILP),
        # summed once at the end.
        partial = [None] * C
        k = 0                              # tap index k = dy*3 + dx
        for v in v_slabs:
            left = roll(v, 1)    # v[p - 1]  (generic ox = -1)
            right = roll(v, -1)  # v[p + 1]  (generic ox = +1)
            t_slabs = (
                jnp.where(is_col0, right, left),   # ox = -1 : col -1 -> col 1
                v,                                 # ox =  0
                jnp.where(is_colL, left, right),   # ox = +1 : col W -> col W-2
            )
            for t in t_slabs:
                wk = w_ref[base + k]          # (Cin, Cout, 1): tiny per-tap vld,
                for ci in range(C):           # keeps weights out of vregs.
                    # (1, HW) sublane-broadcast  *  (Cout, 1) lane-broadcast
                    term = t[ci:ci + 1, :] * wk[ci]
                    partial[ci] = term if partial[ci] is None else partial[ci] + term
                k += 1
        # Conv bias omitted on purpose: bias -> InstanceNorm(affine=False) is a
        # mathematical no-op (the per-channel spatial mean removes it exactly).
        return tree_sum(partial)

    def inorm(a):
        # Fused single-pass statistics (biased variance), f32 throughout.
        mu = jnp.mean(a, axis=1, keepdims=True)
        ex2 = jnp.mean(a * a, axis=1, keepdims=True)
        var = ex2 - mu * mu
        return (a - mu) * jax.lax.rsqrt(var + EPS)

    for b in range(BN):
        x = x_ref[b].astype(jnp.float32)               # (C, HW)
        h = jnp.maximum(inorm(conv3x3(x, 0)), 0.0)     # conv1 + IN + ReLU
        y = inorm(conv3x3(h, 9))                       # conv2 + IN
        o_ref[b] = (x + y).astype(o_ref.dtype)         # residual add


def residual_block(x_nchw, w1_oihw, b1, w2_oihw, b2, *, samples_per_step=1):
    """Forward pass of ResidualBlock.  x: (N,C,H,W) f32; weights OIHW (C,C,3,3).

    b1/b2 are accepted for interface parity with the PyTorch module but unused:
    a conv bias feeding InstanceNorm2d(affine=False) cancels exactly.
    """
    del b1, b2
    N, C, H, W = x_nchw.shape
    HW = H * W
    assert HW % 128 == 0, "H*W must be a multiple of 128 for the lane-dense layout"
    assert N % samples_per_step == 0
    BN = samples_per_step

    # NCHW row-major flatten: per (n, c) the lane index is p = y*W + x.
    x = x_nchw.reshape(N, C, HW)

    def cvt(w):  # OIHW -> (9, Cin, Cout, 1), tap index k = dy*3 + dx
        return jnp.transpose(w, (2, 3, 1, 0)).reshape(9, C, C)[..., None]

    # Both convs' weights in one operand: (18, Cin, Cout, 1); conv1 = taps 0..8,
    # conv2 = taps 9..17.
    w = jnp.concatenate([cvt(w1_oihw), cvt(w2_oihw)], axis=0)

    kernel = functools.partial(_residual_block_kernel, width=W)
    out = pl.pallas_call(
        kernel,
        out_shape=jax.ShapeDtypeStruct((N, C, HW), x.dtype),
        grid=(N // BN,),
        in_specs=[
            pl.BlockSpec((BN, C, HW), lambda n: (n, 0, 0)),
            pl.BlockSpec((2 * 9, C, C, 1), lambda n: (0, 0, 0, 0)),
        ],
        out_specs=pl.BlockSpec((BN, C, HW), lambda n: (n, 0, 0)),
        compiler_params=pltpu.CompilerParams(
            dimension_semantics=("parallel",),   # batch axis -> both TCs on v7x
            vmem_limit_bytes=32 * 1024 * 1024,
        ),
        cost_estimate=pl.CostEstimate(
            flops=2 * 2 * 9 * N * H * W * C * C,
            transcendentals=2 * N * C,
            bytes_accessed=2 * N * C * HW * 4 + 2 * 9 * C * C * 4,
        ),
    )(x, w)

    return out.reshape(N, C, H, W)


def _reference(x, w1, b1, w2, b2):
    """Pure-JAX reference of the PyTorch forward (NCHW)."""
    def conv(a, w, b):
        ap = jnp.pad(a, ((0, 0), (0, 0), (1, 1), (1, 1)), mode="reflect")
        y = jax.lax.conv_general_dilated(
            ap, w, window_strides=(1, 1), padding="VALID",
            dimension_numbers=("NCHW", "OIHW", "NCHW"))
        return y + b[None, :, None, None]

    def inorm(a):
        mu = jnp.mean(a, axis=(2, 3), keepdims=True)
        var = jnp.mean((a - mu) ** 2, axis=(2, 3), keepdims=True)
        return (a - mu) * jax.lax.rsqrt(var + EPS)

    h = jnp.maximum(inorm(conv(x, w1, b1)), 0.0)
    return x + inorm(conv(h, w2, b2))


if __name__ == "__main__":
    N, C, H, W = 2, 4, 16, 16
    key = jax.random.PRNGKey(0)
    kx, kw1, kb1, kw2, kb2 = jax.random.split(key, 5)

    x = jax.random.normal(kx, (N, C, H, W), dtype=jnp.float32)
    # PyTorch Conv2d-style init shapes: (Cout, Cin, 3, 3)
    fan_in = C * 3 * 3
    bound = 1.0 / np.sqrt(fan_in)
    w1 = jax.random.uniform(kw1, (C, C, 3, 3), jnp.float32, -bound, bound)
    b1 = jax.random.uniform(kb1, (C,), jnp.float32, -bound, bound)
    w2 = jax.random.uniform(kw2, (C, C, 3, 3), jnp.float32, -bound, bound)
    b2 = jax.random.uniform(kb2, (C,), jnp.float32, -bound, bound)

    out = jax.block_until_ready(residual_block(x, w1, b1, w2, b2))
    ref = jax.block_until_ready(_reference(x, w1, b1, w2, b2))
    np.testing.assert_allclose(np.asarray(out), np.asarray(ref), rtol=1e-4, atol=1e-4)

    print("KERNEL_OK")
</pallas_src>

<mosaic_0001>
module attributes {stable_mosaic.version = 11 : i64} {
  func.func @_residual_block_kernel(%arg0: i32, %arg1: memref<1x4x256xf32, #tpu.memory_space<vmem>>, %arg2: memref<18x4x4x1xf32, #tpu.memory_space<vmem>>, %arg3: memref<1x4x256xf32, #tpu.memory_space<vmem>>) attributes {dimension_semantics = [#tpu.dimension_semantics<parallel>], iteration_bounds = array<i64: 2>, scalar_prefetch = 0 : i64, scratch_operands = 0 : i64, tpu.core_type = #tpu.core_type<tc>, window_params = [{transform_indices = @transform_0, window_bounds = array<i64: 1, 4, 256>}, {pipeline_mode = #tpu.pipeline_mode<synchronous>, transform_indices = @transform_1, window_bounds = array<i64: 18, 4, 4, 1>}, {transform_indices = @transform_2, window_bounds = array<i64: 1, 4, 256>}]} {
    %0 = tpu.iota {dimensions = array<i32: 1>} : vector<4x256xi32>
    %c16_i32 = arith.constant 16 : i32
    %c0_i32 = arith.constant 0 : i32
    %1 = arith.cmpi eq, %c16_i32, %c0_i32 : i32
    %c1_i32 = arith.constant 1 : i32
    %2 = arith.select %1, %c1_i32, %c16_i32 : i32
    %3 = vector.broadcast %2 : i32 to vector<4x256xi32>
    %4 = arith.remsi %0, %3 : vector<4x256xi32>
    %c0_i32_0 = arith.constant 0 : i32
    %5 = vector.broadcast %c0_i32_0 : i32 to vector<4x256xi32>
    %6 = arith.cmpi ne, %4, %5 : vector<4x256xi32>
    %c0_i32_1 = arith.constant 0 : i32
    %7 = vector.broadcast %c0_i32_1 : i32 to vector<4x256xi32>
    %8 = arith.cmpi slt, %4, %7 : vector<4x256xi32>
    %c0_i32_2 = arith.constant 0 : i32
    %9 = arith.cmpi slt, %2, %c0_i32_2 : i32
    %10 = vector.broadcast %9 : i1 to vector<4x256xi1>
    %11 = vector.broadcast %10 : vector<4x256xi1> to vector<4x256xi1>
    %12 = arith.xori %8, %11 : vector<4x256xi1>
    %13 = arith.andi %12, %6 : vector<4x256xi1>
    %14 = vector.broadcast %2 : i32 to vector<4x256xi32>
    %15 = arith.addi %4, %14 : vector<4x256xi32>
    %16 = arith.select %13, %15, %4 : vector<4x256xi1>, vector<4x256xi32>
    %c16_i32_3 = arith.constant 16 : i32
    %17 = vector.broadcast %c16_i32_3 : i32 to vector<4x256xi32>
    %18 = arith.cmpi slt, %0, %17 : vector<4x256xi32>
    %c240_i32 = arith.constant 240 : i32
    %19 = vector.broadcast %c240_i32 : i32 to vector<4x256xi32>
    %20 = arith.cmpi sge, %0, %19 : vector<4x256xi32>
    %c0_i32_4 = arith.constant 0 : i32
    %21 = vector.broadcast %c0_i32_4 : i32 to vector<4x256xi32>
    %22 = arith.cmpi eq, %16, %21 : vector<4x256xi32>
    %c15_i32 = arith.constant 15 : i32
    %23 = vector.broadcast %c15_i32 : i32 to vector<4x256xi32>
    %24 = arith.cmpi eq, %16, %23 : vector<4x256xi32>
    %c0 = arith.constant 0 : index
    %c0_5 = arith.constant 0 : index
    %c0_6 = arith.constant 0 : index
    %25 = vector.load %arg1[%c0, %c0_5, %c0_6] : memref<1x4x256xf32, #tpu.memory_space<vmem>>, vector<1x4x256xf32>
    %26 = vector.shape_cast %25 : vector<1x4x256xf32> to vector<4x256xf32>
    %c16_i32_7 = arith.constant 16 : i32
    %27 = tpu.dynamic_rotate %26 by %c16_i32_7 dim 1 : vector<4x256xf32>, i32 -> vector<4x256xf32>
    %c240_i32_8 = arith.constant 240 : i32
    %28 = tpu.dynamic_rotate %26 by %c240_i32_8 dim 1 : vector<4x256xf32>, i32 -> vector<4x256xf32>
    %29 = arith.select %18, %28, %27 : vector<4x256xi1>, vector<4x256xf32>
    %30 = arith.select %20, %27, %28 : vector<4x256xi1>, vector<4x256xf32>
    %c1_i32_9 = arith.constant 1 : i32
    %31 = tpu.dynamic_rotate %29 by %c1_i32_9 dim 1 : vector<4x256xf32>, i32 -> vector<4x256xf32>
    %c255_i32 = arith.constant 255 : i32
    %32 = tpu.dynamic_rotate %29 by %c255_i32 dim 1 : vector<4x256xf32>, i32 -> vector<4x256xf32>
    %33 = arith.select %22, %32, %31 : vector<4x256xi1>, vector<4x256xf32>
    %34 = arith.select %24, %31, %32 : vector<4x256xi1>, vector<4x256xf32>
    %c0_10 = arith.constant 0 : index
    %c0_11 = arith.constant 0 : index
    %c0_12 = arith.constant 0 : index
    %c0_13 = arith.constant 0 : index
    %35 = vector.load %arg2[%c0_10, %c0_11, %c0_12, %c0_13] : memref<18x4x4x1xf32, #tpu.memory_space<vmem>>, vector<1x4x4x1xf32>
    %36 = vector.shape_cast %35 : vector<1x4x4x1xf32> to vector<4x4x1xf32>
    %37 = vector.extract_strided_slice %33 {offsets = [0, 0], sizes = [1, 256], strides = [1, 1]} : vector<4x256xf32> to vector<1x256xf32>
    %38 = vector.extract_strided_slice %36 {offsets = [0, 0, 0], sizes = [1, 4, 1], strides = [1, 1, 1]} : vector<4x4x1xf32> to vector<1x4x1xf32>
    %39 = vector.shape_cast %38 : vector<1x4x1xf32> to vector<4x1xf32>
    %40 = vector.broadcast %37 : vector<1x256xf32> to vector<4x256xf32>
    %41 = vector.broadcast %39 : vector<4x1xf32> to vector<4x256xf32>
    %42 = arith.mulf %40, %41 : vector<4x256xf32>
    %43 = vector.extract_strided_slice %33 {offsets = [1, 0], sizes = [1, 256], strides = [1, 1]} : vector<4x256xf32> to vector<1x256xf32>
    %44 = vector.extract_strided_slice %36 {offsets = [1, 0, 0], sizes = [1, 4, 1], strides = [1, 1, 1]} : vector<4x4x1xf32> to vector<1x4x1xf32>
    %45 = vector.shape_cast %44 : vector<1x4x1xf32> to vector<4x1xf32>
    %46 = vector.broadcast %43 : vector<1x256xf32> to vector<4x256xf32>
    %47 = vector.broadcast %45 : vector<4x1xf32> to vector<4x256xf32>
    %48 = arith.mulf %46, %47 : vector<4x256xf32>
    %49 = vector.extract_strided_slice %33 {offsets = [2, 0], sizes = [1, 256], strides = [1, 1]} : vector<4x256xf32> to vector<1x256xf32>
    %50 = vector.extract_strided_slice %36 {offsets = [2, 0, 0], sizes = [1, 4, 1], strides = [1, 1, 1]} : vector<4x4x1xf32> to vector<1x4x1xf32>
    %51 = vector.shape_cast %50 : vector<1x4x1xf32> to vector<4x1xf32>
    %52 = vector.broadcast %49 : vector<1x256xf32> to vector<4x256xf32>
    %53 = vector.broadcast %51 : vector<4x1xf32> to vector<4x256xf32>
    %54 = arith.mulf %52, %53 : vector<4x256xf32>
    %55 = vector.extract_strided_slice %33 {offsets = [3, 0], sizes = [1, 256], strides = [1, 1]} : vector<4x256xf32> to vector<1x256xf32>
    %56 = vector.extract_strided_slice %36 {offsets = [3, 0, 0], sizes = [1, 4, 1], strides = [1, 1, 1]} : vector<4x4x1xf32> to vector<1x4x1xf32>
    %57 = vector.shape_cast %56 : vector<1x4x1xf32> to vector<4x1xf32>
    %58 = vector.broadcast %55 : vector<1x256xf32> to vector<4x256xf32>
    %59 = vector.broadcast %57 : vector<4x1xf32> to vector<4x256xf32>
    %60 = arith.mulf %58, %59 : vector<4x256xf32>
    %c1 = arith.constant 1 : index
    %c0_14 = arith.constant 0 : index
    %c0_15 = arith.constant 0 : index
    %c0_16 = arith.constant 0 : index
    %61 = vector.load %arg2[%c1, %c0_14, %c0_15, %c0_16] : memref<18x4x4x1xf32, #tpu.memory_space<vmem>>, vector<1x4x4x1xf32>
    %62 = vector.shape_cast %61 : vector<1x4x4x1xf32> to vector<4x4x1xf32>
    %63 = vector.extract_strided_slice %29 {offsets = [0, 0], sizes = [1, 256], strides = [1, 1]} : vector<4x256xf32> to vector<1x256xf32>
    %64 = vector.extract_strided_slice %62 {offsets = [0, 0, 0], sizes = [1, 4, 1], strides = [1, 1, 1]} : vector<4x4x1xf32> to vector<1x4x1xf32>
    %65 = vector.shape_cast %64 : vector<1x4x1xf32> to vector<4x1xf32>
    %66 = vector.broadcast %63 : vector<1x256xf32> to vector<4x256xf32>
    %67 = vector.broadcast %65 : vector<4x1xf32> to vector<4x256xf32>
    %68 = arith.mulf %66, %67 : vector<4x256xf32>
    %69 = arith.addf %42, %68 : vector<4x256xf32>
    %70 = vector.extract_strided_slice %29 {offsets = [1, 0], sizes = [1, 256], strides = [1, 1]} : vector<4x256xf32> to vector<1x256xf32>
    %71 = vector.extract_strided_slice %62 {offsets = [1, 0, 0], sizes = [1, 4, 1], strides = [1, 1, 1]} : vector<4x4x1xf32> to vector<1x4x1xf32>
    %72 = vector.shape_cast %71 : vector<1x4x1xf32> to vector<4x1xf32>
    %73 = vector.broadcast %70 : vector<1x256xf32> to vector<4x256xf32>
    %74 = vector.broadcast %72 : vector<4x1xf32> to vector<4x256xf32>
    %75 = arith.mulf %73, %74 : vector<4x256xf32>
    %76 = arith.addf %48, %75 : vector<4x256xf32>
    %77 = vector.extract_strided_slice %29 {offsets = [2, 0], sizes = [1, 256], strides = [1, 1]} : vector<4x256xf32> to vector<1x256xf32>
    %78 = vector.extract_strided_slice %62 {offsets = [2, 0, 0], sizes = [1, 4, 1], strides = [1, 1, 1]} : vector<4x4x1xf32> to vector<1x4x1xf32>
    %79 = vector.shape_cast %78 : vector<1x4x1xf32> to vector<4x1xf32>
    %80 = vector.broadcast %77 : vector<1x256xf32> to vector<4x256xf32>
    %81 = vector.broadcast %79 : vector<4x1xf32> to vector<4x256xf32>
    %82 = arith.mulf %80, %81 : vector<4x256xf32>
    %83 = arith.addf %54, %82 : vector<4x256xf32>
    %84 = vector.extract_strided_slice %29 {offsets = [3, 0], sizes = [1, 256], strides = [1, 1]} : vector<4x256xf32> to vector<1x256xf32>
    %85 = vector.extract_strided_slice %62 {offsets = [3, 0, 0], sizes = [1, 4, 1], strides = [1, 1, 1]} : vector<4x4x1xf32> to vector<1x4x1xf32>
    %86 = vector.shape_cast %85 : vector<1x4x1xf32> to vector<4x1xf32>
    %87 = vector.broadcast %84 : vector<1x256xf32> to vector<4x256xf32>
    %88 = vector.broadcast %86 : vector<4x1xf32> to vector<4x256xf32>
    %89 = arith.mulf %87, %88 : vector<4x256xf32>
    %90 = arith.addf %60, %89 : vector<4x256xf32>
    %c2 = arith.constant 2 : index
    %c0_17 = arith.constant 0 : index
    %c0_18 = arith.constant 0 : index
    %c0_19 = arith.constant 0 : index
    %91 = vector.load %arg2[%c2, %c0_17, %c0_18, %c0_19] : memref<18x4x4x1xf32, #tpu.memory_space<vmem>>, vector<1x4x4x1xf32>
    %92 = vector.shape_cast %91 : vector<1x4x4x1xf32> to vector<4x4x1xf32>
    %93 = vector.extract_strided_slice %34 {offsets = [0, 0], sizes = [1, 256], strides = [1, 1]} : vector<4x256xf32> to vector<1x256xf32>
    %94 = vector.extract_strided_slice %92 {offsets = [0, 0, 0], sizes = [1, 4, 1], strides = [1, 1, 1]} : vector<4x4x1xf32> to vector<1x4x1xf32>
    %95 = vector.shape_cast %94 : vector<1x4x1xf32> to vector<4x1xf32>
    %96 = vector.broadcast %93 : vector<1x256xf32> to vector<4x256xf32>
    %97 = vector.broadcast %95 : vector<4x1xf32> to vector<4x256xf32>
    %98 = arith.mulf %96, %97 : vector<4x256xf32>
    %99 = arith.addf %69, %98 : vector<4x256xf32>
    %100 = vector.extract_strided_slice %34 {offsets = [1, 0], sizes = [1, 256], strides = [1, 1]} : vector<4x256xf32> to vector<1x256xf32>
    %101 = vector.extract_strided_slice %92 {offsets = [1, 0, 0], sizes = [1, 4, 1], strides = [1, 1, 1]} : vector<4x4x1xf32> to vector<1x4x1xf32>
    %102 = vector.shape_cast %101 : vector<1x4x1xf32> to vector<4x1xf32>
    %103 = vector.broadcast %100 : vector<1x256xf32> to vector<4x256xf32>
    %104 = vector.broadcast %102 : vector<4x1xf32> to vector<4x256xf32>
    %105 = arith.mulf %103, %104 : vector<4x256xf32>
    %106 = arith.addf %76, %105 : vector<4x256xf32>
    %107 = vector.extract_strided_slice %34 {offsets = [2, 0], sizes = [1, 256], strides = [1, 1]} : vector<4x256xf32> to vector<1x256xf32>
    %108 = vector.extract_strided_slice %92 {offsets = [2, 0, 0], sizes = [1, 4, 1], strides = [1, 1, 1]} : vector<4x4x1xf32> to vector<1x4x1xf32>
    %109 = vector.shape_cast %108 : vector<1x4x1xf32> to vector<4x1xf32>
    %110 = vector.broadcast %107 : vector<1x256xf32> to vector<4x256xf32>
    %111 = vector.broadcast %109 : vector<4x1xf32> to vector<4x256xf32>
    %112 = arith.mulf %110, %111 : vector<4x256xf32>
    %113 = arith.addf %83, %112 : vector<4x256xf32>
    %114 = vector.extract_strided_slice %34 {offsets = [3, 0], sizes = [1, 256], strides = [1, 1]} : vector<4x256xf32> to vector<1x256xf32>
    %115 = vector.extract_strided_slice %92 {offsets = [3, 0, 0], sizes = [1, 4, 1], strides = [1, 1, 1]} : vector<4x4x1xf32> to vector<1x4x1xf32>
    %116 = vector.shape_cast %115 : vector<1x4x1xf32> to vector<4x1xf32>
    %117 = vector.broadcast %114 : vector<1x256xf32> to vector<4x256xf32>
    %118 = vector.broadcast %116 : vector<4x1xf32> to vector<4x256xf32>
    %119 = arith.mulf %117, %118 : vector<4x256xf32>
    %120 = arith.addf %90, %119 : vector<4x256xf32>
    %c1_i32_20 = arith.constant 1 : i32
    %121 = tpu.dynamic_rotate %26 by %c1_i32_20 dim 1 : vector<4x256xf32>, i32 -> vector<4x256xf32>
    %c255_i32_21 = arith.constant 255 : i32
    %122 = tpu.dynamic_rotate %26 by %c255_i32_21 dim 1 : vector<4x256xf32>, i32 -> vector<4x256xf32>
    %123 = arith.select %22, %122, %121 : vector<4x256xi1>, vector<4x256xf32>
    %124 = arith.select %24, %121, %122 : vector<4x256xi1>, vector<4x256xf32>
    %c3 = arith.constant 3 : index
    %c0_22 = arith.constant 0 : index
    %c0_23 = arith.constant 0 : index
    %c0_24 = arith.constant 0 : index
    %125 = vector.load %arg2[%c3, %c0_22, %c0_23, %c0_24] : memref<18x4x4x1xf32, #tpu.memory_space<vmem>>, vector<1x4x4x1xf32>
    %126 = vector.shape_cast %125 : vector<1x4x4x1xf32> to vector<4x4x1xf32>
    %127 = vector.extract_strided_slice %123 {offsets = [0, 0], sizes = [1, 256], strides = [1, 1]} : vector<4x256xf32> to vector<1x256xf32>
    %128 = vector.extract_strided_slice %126 {offsets = [0, 0, 0], sizes = [1, 4, 1], strides = [1, 1, 1]} : vector<4x4x1xf32> to vector<1x4x1xf32>
    %129 = vector.shape_cast %128 : vector<1x4x1xf32> to vector<4x1xf32>
    %130 = vector.broadcast %127 : vector<1x256xf32> to vector<4x256xf32>
    %131 = vector.broadcast %129 : vector<4x1xf32> to vector<4x256xf32>
    %132 = arith.mulf %130, %131 : vector<4x256xf32>
    %133 = arith.addf %99, %132 : vector<4x256xf32>
    %134 = vector.extract_strided_slice %123 {offsets = [1, 0], sizes = [1, 256], strides = [1, 1]} : vector<4x256xf32> to vector<1x256xf32>
    %135 = vector.extract_strided_slice %126 {offsets = [1, 0, 0], sizes = [1, 4, 1], strides = [1, 1, 1]} : vector<4x4x1xf32> to vector<1x4x1xf32>
    %136 = vector.shape_cast %135 : vector<1x4x1xf32> to vector<4x1xf32>
    %137 = vector.broadcast %134 : vector<1x256xf32> to vector<4x256xf32>
    %138 = vector.broadcast %136 : vector<4x1xf32> to vector<4x256xf32>
    %139 = arith.mulf %137, %138 : vector<4x256xf32>
    %140 = arith.addf %106, %139 : vector<4x256xf32>
    %141 = vector.extract_strided_slice %123 {offsets = [2, 0], sizes = [1, 256], strides = [1, 1]} : vector<4x256xf32> to vector<1x256xf32>
    %142 = vector.extract_strided_slice %126 {offsets = [2, 0, 0], sizes = [1, 4, 1], strides = [1, 1, 1]} : vector<4x4x1xf32> to vector<1x4x1xf32>
    %143 = vector.shape_cast %142 : vector<1x4x1xf32> to vector<4x1xf32>
    %144 = vector.broadcast %141 : vector<1x256xf32> to vector<4x256xf32>
    %145 = vector.broadcast %143 : vector<4x1xf32> to vector<4x256xf32>
    %146 = arith.mulf %144, %145 : vector<4x256xf32>
    %147 = arith.addf %113, %146 : vector<4x256xf32>
    %148 = vector.extract_strided_slice %123 {offsets = [3, 0], sizes = [1, 256], strides = [1, 1]} : vector<4x256xf32> to vector<1x256xf32>
    %149 = vector.extract_strided_slice %126 {offsets = [3, 0, 0], sizes = [1, 4, 1], strides = [1, 1, 1]} : vector<4x4x1xf32> to vector<1x4x1xf32>
    %150 = vector.shape_cast %149 : vector<1x4x1xf32> to vector<4x1xf32>
    %151 = vector.broadcast %148 : vector<1x256xf32> to vector<4x256xf32>
    %152 = vector.broadcast %150 : vector<4x1xf32> to vector<4x256xf32>
    %153 = arith.mulf %151, %152 : vector<4x256xf32>
    %154 = arith.addf %120, %153 : vector<4x256xf32>
    %c4 = arith.constant 4 : index
    %c0_25 = arith.constant 0 : index
    %c0_26 = arith.constant 0 : index
    %c0_27 = arith.constant 0 : index
    %155 = vector.load %arg2[%c4, %c0_25, %c0_26, %c0_27] : memref<18x4x4x1xf32, #tpu.memory_space<vmem>>, vector<1x4x4x1xf32>
    %156 = vector.shape_cast %155 : vector<1x4x4x1xf32> to vector<4x4x1xf32>
    %157 = vector.extract_strided_slice %26 {offsets = [0, 0], sizes = [1, 256], strides = [1, 1]} : vector<4x256xf32> to vector<1x256xf32>
    %158 = vector.extract_strided_slice %156 {offsets = [0, 0, 0], sizes = [1, 4, 1], strides = [1, 1, 1]} : vector<4x4x1xf32> to vector<1x4x1xf32>
    %159 = vector.shape_cast %158 : vector<1x4x1xf32> to vector<4x1xf32>
    %160 = vector.broadcast %157 : vector<1x256xf32> to vector<4x256xf32>
    %161 = vector.broadcast %159 : vector<4x1xf32> to vector<4x256xf32>
    %162 = arith.mulf %160, %161 : vector<4x256xf32>
    %163 = arith.addf %133, %162 : vector<4x256xf32>
    %164 = vector.extract_strided_slice %26 {offsets = [1, 0], sizes = [1, 256], strides = [1, 1]} : vector<4x256xf32> to vector<1x256xf32>
    %165 = vector.extract_strided_slice %156 {offsets = [1, 0, 0], sizes = [1, 4, 1], strides = [1, 1, 1]} : vector<4x4x1xf32> to vector<1x4x1xf32>
    %166 = vector.shape_cast %165 : vector<1x4x1xf32> to vector<4x1xf32>
    %167 = vector.broadcast %164 : vector<1x256xf32> to vector<4x256xf32>
    %168 = vector.broadcast %166 : vector<4x1xf32> to vector<4x256xf32>
    %169 = arith.mulf %167, %168 : vector<4x256xf32>
    %170 = arith.addf %140, %169 : vector<4x256xf32>
    %171 = vector.extract_strided_slice %26 {offsets = [2, 0], sizes = [1, 256], strides = [1, 1]} : vector<4x256xf32> to vector<1x256xf32>
    %172 = vector.extract_strided_slice %156 {offsets = [2, 0, 0], sizes = [1, 4, 1], strides = [1, 1, 1]} : vector<4x4x1xf32> to vector<1x4x1xf32>
    %173 = vector.shape_cast %172 : vector<1x4x1xf32> to vector<4x1xf32>
    %174 = vector.broadcast %171 : vector<1x256xf32> to vector<4x256xf32>
    %175 = vector.broadcast %173 : vector<4x1xf32> to vector<4x256xf32>
    %176 = arith.mulf %174, %175 : vector<4x256xf32>
    %177 = arith.addf %147, %176 : vector<4x256xf32>
    %178 = vector.extract_strided_slice %26 {offsets = [3, 0], sizes = [1, 256], strides = [1, 1]} : vector<4x256xf32> to vector<1x256xf32>
    %179 = vector.extract_strided_slice %156 {offsets = [3, 0, 0], sizes = [1, 4, 1], strides = [1, 1, 1]} : vector<4x4x1xf32> to vector<1x4x1xf32>
    %180 = vector.shape_cast %179 : vector<1x4x1xf32> to vector<4x1xf32>
    %181 = vector.broadcast %178 : vector<1x256xf32> to vector<4x256xf32>
    %182 = vector.broadcast %180 : vector<4x1xf32> to vector<4x256xf32>
    %183 = arith.mulf %181, %182 : vector<4x256xf32>
    %184 = arith.addf %154, %183 : vector<4x256xf32>
    %c5 = arith.constant 5 : index
    %c0_28 = arith.constant 0 : index
    %c0_29 = arith.constant 0 : index
    %c0_30 = arith.constant 0 : index
    %185 = vector.load %arg2[%c5, %c0_28, %c0_29, %c0_30] : memref<18x4x4x1xf32, #tpu.memory_space<vmem>>, vector<1x4x4x1xf32>
    %186 = vector.shape_cast %185 : vector<1x4x4x1xf32> to vector<4x4x1xf32>
    %187 = vector.extract_strided_slice %124 {offsets = [0, 0], sizes = [1, 256], strides = [1, 1]} : vector<4x256xf32> to vector<1x256xf32>
    %188 = vector.extract_strided_slice %186 {offsets = [0, 0, 0], sizes = [1, 4, 1], strides = [1, 1, 1]} : vector<4x4x1xf32> to vector<1x4x1xf32>
    %189 = vector.shape_cast %188 : vector<1x4x1xf32> to vector<4x1xf32>
    %190 = vector.broadcast %187 : vector<1x256xf32> to vector<4x256xf32>
    %191 = vector.broadcast %189 : vector<4x1xf32> to vector<4x256xf32>
    %192 = arith.mulf %190, %191 : vector<4x256xf32>
    %193 = arith.addf %163, %192 : vector<4x256xf32>
    %194 = vector.extract_strided_slice %124 {offsets = [1, 0], sizes = [1, 256], strides = [1, 1]} : vector<4x256xf32> to vector<1x256xf32>
    %195 = vector.extract_strided_slice %186 {offsets = [1, 0, 0], sizes = [1, 4, 1], strides = [1, 1, 1]} : vector<4x4x1xf32> to vector<1x4x1xf32>
    %196 = vector.shape_cast %195 : vector<1x4x1xf32> to vector<4x1xf32>
    %197 = vector.broadcast %194 : vector<1x256xf32> to vector<4x256xf32>
    %198 = vector.broadcast %196 : vector<4x1xf32> to vector<4x256xf32>
    %199 = arith.mulf %197, %198 : vector<4x256xf32>
    %200 = arith.addf %170, %199 : vector<4x256xf32>
    %201 = vector.extract_strided_slice %124 {offsets = [2, 0], sizes = [1, 256], strides = [1, 1]} : vector<4x256xf32> to vector<1x256xf32>
    %202 = vector.extract_strided_slice %186 {offsets = [2, 0, 0], sizes = [1, 4, 1], strides = [1, 1, 1]} : vector<4x4x1xf32> to vector<1x4x1xf32>
    %203 = vector.shape_cast %202 : vector<1x4x1xf32> to vector<4x1xf32>
    %204 = vector.broadcast %201 : vector<1x256xf32> to vector<4x256xf32>
    %205 = vector.broadcast %203 : vector<4x1xf32> to vector<4x256xf32>
    %206 = arith.mulf %204, %205 : vector<4x256xf32>
    %207 = arith.addf %177, %206 : vector<4x256xf32>
    %208 = vector.extract_strided_slice %124 {offsets = [3, 0], sizes = [1, 256], strides = [1, 1]} : vector<4x256xf32> to vector<1x256xf32>
    %209 = vector.extract_strided_slice %186 {offsets = [3, 0, 0], sizes = [1, 4, 1], strides = [1, 1, 1]} : vector<4x4x1xf32> to vector<1x4x1xf32>
    %210 = vector.shape_cast %209 : vector<1x4x1xf32> to vector<4x1xf32>
    %211 = vector.broadcast %208 : vector<1x256xf32> to vector<4x256xf32>
    %212 = vector.broadcast %210 : vector<4x1xf32> to vector<4x256xf32>
    %213 = arith.mulf %211, %212 : vector<4x256xf32>
    %214 = arith.addf %184, %213 : vector<4x256xf32>
    %c1_i32_31 = arith.constant 1 : i32
    %215 = tpu.dynamic_rotate %30 by %c1_i32_31 dim 1 : vector<4x256xf32>, i32 -> vector<4x256xf32>
    %c255_i32_32 = arith.constant 255 : i32
    %216 = tpu.dynamic_rotate %30 by %c255_i32_32 dim 1 : vector<4x256xf32>, i32 -> vector<4x256xf32>
    %217 = arith.select %22, %216, %215 : vector<4x256xi1>, vector<4x256xf32>
    %218 = arith.select %24, %215, %216 : vector<4x256xi1>, vector<4x256xf32>
    %c6 = arith.constant 6 : index
    %c0_33 = arith.constant 0 : index
    %c0_34 = arith.constant 0 : index
    %c0_35 = arith.constant 0 : index
    %219 = vector.load %arg2[%c6, %c0_33, %c0_34, %c0_35] : memref<18x4x4x1xf32, #tpu.memory_space<vmem>>, vector<1x4x4x1xf32>
    %220 = vector.shape_cast %219 : vector<1x4x4x1xf32> to vector<4x4x1xf32>
    %221 = vector.extract_strided_slice %217 {offsets = [0, 0], sizes = [1, 256], strides = [1, 1]} : vector<4x256xf32> to vector<1x256xf32>
    %222 = vector.extract_strided_slice %220 {offsets = [0, 0, 0], sizes = [1, 4, 1], strides = [1, 1, 1]} : vector<4x4x1xf32> to vector<1x4x1xf32>
    %223 = vector.shape_cast %222 : vector<1x4x1xf32> to vector<4x1xf32>
    %224 = vector.broadcast %221 : vector<1x256xf32> to vector<4x256xf32>
    %225 = vector.broadcast %223 : vector<4x1xf32> to vector<4x256xf32>
    %226 = arith.mulf %224, %225 : vector<4x256xf32>
    %227 = arith.addf %193, %226 : vector<4x256xf32>
    %228 = vector.extract_strided_slice %217 {offsets = [1, 0], sizes = [1, 256], strides = [1, 1]} : vector<4x256xf32> to vector<1x256xf32>
    %229 = vector.extract_strided_slice %220 {offsets = [1, 0, 0], sizes = [1, 4, 1], strides = [1, 1, 1]} : vector<4x4x1xf32> to vector<1x4x1xf32>
    %230 = vector.shape_cast %229 : vector<1x4x1xf32> to vector<4x1xf32>
    %231 = vector.broadcast %228 : vector<1x256xf32> to vector<4x256xf32>
    %232 = vector.broadcast %230 : vector<4x1xf32> to vector<4x256xf32>
    %233 = arith.mulf %231, %232 : vector<4x256xf32>
    %234 = arith.addf %200, %233 : vector<4x256xf32>
    %235 = vector.extract_strided_slice %217 {offsets = [2, 0], sizes = [1, 256], strides = [1, 1]} : vector<4x256xf32> to vector<1x256xf32>
    %236 = vector.extract_strided_slice %220 {offsets = [2, 0, 0], sizes = [1, 4, 1], strides = [1, 1, 1]} : vector<4x4x1xf32> to vector<1x4x1xf32>
    %237 = vector.shape_cast %236 : vector<1x4x1xf32> to vector<4x1xf32>
    %238 = vector.broadcast %235 : vector<1x256xf32> to vector<4x256xf32>
    %239 = vector.broadcast %237 : vector<4x1xf32> to vector<4x256xf32>
    %240 = arith.mulf %238, %239 : vector<4x256xf32>
    %241 = arith.addf %207, %240 : vector<4x256xf32>
    %242 = vector.extract_strided_slice %217 {offsets = [3, 0], sizes = [1, 256], strides = [1, 1]} : vector<4x256xf32> to vector<1x256xf32>
    %243 = vector.extract_strided_slice %220 {offsets = [3, 0, 0], sizes = [1, 4, 1], strides = [1, 1, 1]} : vector<4x4x1xf32> to vector<1x4x1xf32>
    %244 = vector.shape_cast %243 : vector<1x4x1xf32> to vector<4x1xf32>
    %245 = vector.broadcast %242 : vector<1x256xf32> to vector<4x256xf32>
    %246 = vector.broadcast %244 : vector<4x1xf32> to vector<4x256xf32>
    %247 = arith.mulf %245, %246 : vector<4x256xf32>
    %248 = arith.addf %214, %247 : vector<4x256xf32>
    %c7 = arith.constant 7 : index
    %c0_36 = arith.constant 0 : index
    %c0_37 = arith.constant 0 : index
    %c0_38 = arith.constant 0 : index
    %249 = vector.load %arg2[%c7, %c0_36, %c0_37, %c0_38] : memref<18x4x4x1xf32, #tpu.memory_space<vmem>>, vector<1x4x4x1xf32>
    %250 = vector.shape_cast %249 : vector<1x4x4x1xf32> to vector<4x4x1xf32>
    %251 = vector.extract_strided_slice %30 {offsets = [0, 0], sizes = [1, 256], strides = [1, 1]} : vector<4x256xf32> to vector<1x256xf32>
    %252 = vector.extract_strided_slice %250 {offsets = [0, 0, 0], sizes = [1, 4, 1], strides = [1, 1, 1]} : vector<4x4x1xf32> to vector<1x4x1xf32>
    %253 = vector.shape_cast %252 : vector<1x4x1xf32> to vector<4x1xf32>
    %254 = vector.broadcast %251 : vector<1x256xf32> to vector<4x256xf32>
    %255 = vector.broadcast %253 : vector<4x1xf32> to vector<4x256xf32>
    %256 = arith.mulf %254, %255 : vector<4x256xf32>
    %257 = arith.addf %227, %256 : vector<4x256xf32>
    %258 = vector.extract_strided_slice %30 {offsets = [1, 0], sizes = [1, 256], strides = [1, 1]} : vector<4x256xf32> to vector<1x256xf32>
    %259 = vector.extract_strided_slice %250 {offsets = [1, 0, 0], sizes = [1, 4, 1], strides = [1, 1, 1]} : vector<4x4x1xf32> to vector<1x4x1xf32>
    %260 = vector.shape_cast %259 : vector<1x4x1xf32> to vector<4x1xf32>
    %261 = vector.broadcast %258 : vector<1x256xf32> to vector<4x256xf32>
    %262 = vector.broadcast %260 : vector<4x1xf32> to vector<4x256xf32>
    %263 = arith.mulf %261, %262 : vector<4x256xf32>
    %264 = arith.addf %234, %263 : vector<4x256xf32>
    %265 = vector.extract_strided_slice %30 {offsets = [2, 0], sizes = [1, 256], strides = [1, 1]} : vector<4x256xf32> to vector<1x256xf32>
    %266 = vector.extract_strided_slice %250 {offsets = [2, 0, 0], sizes = [1, 4, 1], strides = [1, 1, 1]} : vector<4x4x1xf32> to vector<1x4x1xf32>
    %267 = vector.shape_cast %266 : vector<1x4x1xf32> to vector<4x1xf32>
    %268 = vector.broadcast %265 : vector<1x256xf32> to vector<4x256xf32>
    %269 = vector.broadcast %267 : vector<4x1xf32> to vector<4x256xf32>
    %270 = arith.mulf %268, %269 : vector<4x256xf32>
    %271 = arith.addf %241, %270 : vector<4x256xf32>
    %272 = vector.extract_strided_slice %30 {offsets = [3, 0], sizes = [1, 256], strides = [1, 1]} : vector<4x256xf32> to vector<1x256xf32>
    %273 = vector.extract_strided_slice %250 {offsets = [3, 0, 0], sizes = [1, 4, 1], strides = [1, 1, 1]} : vector<4x4x1xf32> to vector<1x4x1xf32>
    %274 = vector.shape_cast %273 : vector<1x4x1xf32> to vector<4x1xf32>
    %275 = vector.broadcast %272 : vector<1x256xf32> to vector<4x256xf32>
    %276 = vector.broadcast %274 : vector<4x1xf32> to vector<4x256xf32>
    %277 = arith.mulf %275, %276 : vector<4x256xf32>
    %278 = arith.addf %248, %277 : vector<4x256xf32>
    %c8 = arith.constant 8 : index
    %c0_39 = arith.constant 0 : index
    %c0_40 = arith.constant 0 : index
    %c0_41 = arith.constant 0 : index
    %279 = vector.load %arg2[%c8, %c0_39, %c0_40, %c0_41] : memref<18x4x4x1xf32, #tpu.memory_space<vmem>>, vector<1x4x4x1xf32>
    %280 = vector.shape_cast %279 : vector<1x4x4x1xf32> to vector<4x4x1xf32>
    %281 = vector.extract_strided_slice %218 {offsets = [0, 0], sizes = [1, 256], strides = [1, 1]} : vector<4x256xf32> to vector<1x256xf32>
    %282 = vector.extract_strided_slice %280 {offsets = [0, 0, 0], sizes = [1, 4, 1], strides = [1, 1, 1]} : vector<4x4x1xf32> to vector<1x4x1xf32>
    %283 = vector.shape_cast %282 : vector<1x4x1xf32> to vector<4x1xf32>
    %284 = vector.broadcast %281 : vector<1x256xf32> to vector<4x256xf32>
    %285 = vector.broadcast %283 : vector<4x1xf32> to vector<4x256xf32>
    %286 = arith.mulf %284, %285 : vector<4x256xf32>
    %287 = arith.addf %257, %286 : vector<4x256xf32>
    %288 = vector.extract_strided_slice %218 {offsets = [1, 0], sizes = [1, 256], strides = [1, 1]} : vector<4x256xf32> to vector<1x256xf32>
    %289 = vector.extract_strided_slice %280 {offsets = [1, 0, 0], sizes = [1, 4, 1], strides = [1, 1, 1]} : vector<4x4x1xf32> to vector<1x4x1xf32>
    %290 = vector.shape_cast %289 : vector<1x4x1xf32> to vector<4x1xf32>
    %291 = vector.broadcast %288 : vector<1x256xf32> to vector<4x256xf32>
    %292 = vector.broadcast %290 : vector<4x1xf32> to vector<4x256xf32>
    %293 = arith.mulf %291, %292 : vector<4x256xf32>
    %294 = arith.addf %264, %293 : vector<4x256xf32>
    %295 = vector.extract_strided_slice %218 {offsets = [2, 0], sizes = [1, 256], strides = [1, 1]} : vector<4x256xf32> to vector<1x256xf32>
    %296 = vector.extract_strided_slice %280 {offsets = [2, 0, 0], sizes = [1, 4, 1], strides = [1, 1, 1]} : vector<4x4x1xf32> to vector<1x4x1xf32>
    %297 = vector.shape_cast %296 : vector<1x4x1xf32> to vector<4x1xf32>
    %298 = vector.broadcast %295 : vector<1x256xf32> to vector<4x256xf32>
    %299 = vector.broadcast %297 : vector<4x1xf32> to vector<4x256xf32>
    %300 = arith.mulf %298, %299 : vector<4x256xf32>
    %301 = arith.addf %271, %300 : vector<4x256xf32>
    %302 = vector.extract_strided_slice %218 {offsets = [3, 0], sizes = [1, 256], strides = [1, 1]} : vector<4x256xf32> to vector<1x256xf32>
    %303 = vector.extract_strided_slice %280 {offsets = [3, 0, 0], sizes = [1, 4, 1], strides = [1, 1, 1]} : vector<4x4x1xf32> to vector<1x4x1xf32>
    %304 = vector.shape_cast %303 : vector<1x4x1xf32> to vector<4x1xf32>
    %305 = vector.broadcast %302 : vector<1x256xf32> to vector<4x256xf32>
    %306 = vector.broadcast %304 : vector<4x1xf32> to vector<4x256xf32>
    %307 = arith.mulf %305, %306 : vector<4x256xf32>
    %308 = arith.addf %278, %307 : vector<4x256xf32>
    %309 = arith.addf %287, %294 : vector<4x256xf32>
    %310 = arith.addf %301, %308 : vector<4x256xf32>
    %311 = arith.addf %309, %310 : vector<4x256xf32>
    %cst = arith.constant dense<0.000000e+00> : vector<4xf32>
    %312 = vector.multi_reduction <add>, %311, %cst [1] : vector<4x256xf32> to vector<4xf32>
    %313 = vector.shape_cast %312 : vector<4xf32> to vector<4x1xf32>
    %cst_42 = arith.constant 2.560000e+02 : f32
    %314 = vector.broadcast %cst_42 : f32 to vector<4x1xf32>
    %315 = arith.divf %313, %314 : vector<4x1xf32>
    %316 = arith.mulf %311, %311 : vector<4x256xf32>
    %cst_43 = arith.constant dense<0.000000e+00> : vector<4xf32>
    %317 = vector.multi_reduction <add>, %316, %cst_43 [1] : vector<4x256xf32> to vector<4xf32>
    %318 = vector.shape_cast %317 : vector<4xf32> to vector<4x1xf32>
    %cst_44 = arith.constant 2.560000e+02 : f32
    %319 = vector.broadcast %cst_44 : f32 to vector<4x1xf32>
    %320 = arith.divf %318, %319 : vector<4x1xf32>
    %321 = arith.mulf %315, %315 : vector<4x1xf32>
    %322 = arith.subf %320, %321 : vector<4x1xf32>
    %323 = vector.broadcast %315 : vector<4x1xf32> to vector<4x256xf32>
    %324 = arith.subf %311, %323 : vector<4x256xf32>
    %cst_45 = arith.constant 9.99999974E-6 : f32
    %325 = vector.broadcast %cst_45 : f32 to vector<4x1xf32>
    %326 = arith.addf %322, %325 : vector<4x1xf32>
    %327 = math.rsqrt %326 : vector<4x1xf32>
    %328 = vector.broadcast %327 : vector<4x1xf32> to vector<4x256xf32>
    %329 = arith.mulf %324, %328 : vector<4x256xf32>
    %cst_46 = arith.constant 0.000000e+00 : f32
    %330 = vector.broadcast %cst_46 : f32 to vector<4x256xf32>
    %331 = arith.maximumf %329, %330 : vector<4x256xf32>
    %c16_i32_47 = arith.constant 16 : i32
    %332 = tpu.dynamic_rotate %331 by %c16_i32_47 dim 1 : vector<4x256xf32>, i32 -> vector<4x256xf32>
    %c240_i32_48 = arith.constant 240 : i32
    %333 = tpu.dynamic_rotate %331 by %c240_i32_48 dim 1 : vector<4x256xf32>, i32 -> vector<4x256xf32>
    %334 = arith.select %18, %333, %332 : vector<4x256xi1>, vector<4x256xf32>
    %335 = arith.select %20, %332, %333 : vector<4x256xi1>, vector<4x256xf32>
    %c1_i32_49 = arith.constant 1 : i32
    %336 = tpu.dynamic_rotate %334 by %c1_i32_49 dim 1 : vector<4x256xf32>, i32 -> vector<4x256xf32>
    %c255_i32_50 = arith.constant 255 : i32
    %337 = tpu.dynamic_rotate %334 by %c255_i32_50 dim 1 : vector<4x256xf32>, i32 -> vector<4x256xf32>
    %338 = arith.select %22, %337, %336 : vector<4x256xi1>, vector<4x256xf32>
    %339 = arith.select %24, %336, %337 : vector<4x256xi1>, vector<4x256xf32>
    %c9 = arith.constant 9 : index
    %c0_51 = arith.constant 0 : index
    %c0_52 = arith.constant 0 : index
    %c0_53 = arith.constant 0 : index
    %340 = vector.load %arg2[%c9, %c0_51, %c0_52, %c0_53] : memref<18x4x4x1xf32, #tpu.memory_space<vmem>>, vector<1x4x4x1xf32>
    %341 = vector.shape_cast %340 : vector<1x4x4x1xf32> to vector<4x4x1xf32>
    %342 = vector.extract_strided_slice %338 {offsets = [0, 0], sizes = [1, 256], strides = [1, 1]} : vector<4x256xf32> to vector<1x256xf32>
    %343 = vector.extract_strided_slice %341 {offsets = [0, 0, 0], sizes = [1, 4, 1], strides = [1, 1, 1]} : vector<4x4x1xf32> to vector<1x4x1xf32>
    %344 = vector.shape_cast %343 : vector<1x4x1xf32> to vector<4x1xf32>
    %345 = vector.broadcast %342 : vector<1x256xf32> to vector<4x256xf32>
    %346 = vector.broadcast %344 : vector<4x1xf32> to vector<4x256xf32>
    %347 = arith.mulf %345, %346 : vector<4x256xf32>
    %348 = vector.extract_strided_slice %338 {offsets = [1, 0], sizes = [1, 256], strides = [1, 1]} : vector<4x256xf32> to vector<1x256xf32>
    %349 = vector.extract_strided_slice %341 {offsets = [1, 0, 0], sizes = [1, 4, 1], strides = [1, 1, 1]} : vector<4x4x1xf32> to vector<1x4x1xf32>
    %350 = vector.shape_cast %349 : vector<1x4x1xf32> to vector<4x1xf32>
    %351 = vector.broadcast %348 : vector<1x256xf32> to vector<4x256xf32>
    %352 = vector.broadcast %350 : vector<4x1xf32> to vector<4x256xf32>
    %353 = arith.mulf %351, %352 : vector<4x256xf32>
    %354 = vector.extract_strided_slice %338 {offsets = [2, 0], sizes = [1, 256], strides = [1, 1]} : vector<4x256xf32> to vector<1x256xf32>
    %355 = vector.extract_strided_slice %341 {offsets = [2, 0, 0], sizes = [1, 4, 1], strides = [1, 1, 1]} : vector<4x4x1xf32> to vector<1x4x1xf32>
    %356 = vector.shape_cast %355 : vector<1x4x1xf32> to vector<4x1xf32>
    %357 = vector.broadcast %354 : vector<1x256xf32> to vector<4x256xf32>
    %358 = vector.broadcast %356 : vector<4x1xf32> to vector<4x256xf32>
    %359 = arith.mulf %357, %358 : vector<4x256xf32>
    %360 = vector.extract_strided_slice %338 {offsets = [3, 0], sizes = [1, 256], strides = [1, 1]} : vector<4x256xf32> to vector<1x256xf32>
    %361 = vector.extract_strided_slice %341 {offsets = [3, 0, 0], sizes = [1, 4, 1], strides = [1, 1, 1]} : vector<4x4x1xf32> to vector<1x4x1xf32>
    %362 = vector.shape_cast %361 : vector<1x4x1xf32> to vector<4x1xf32>
    %363 = vector.broadcast %360 : vector<1x256xf32> to vector<4x256xf32>
    %364 = vector.broadcast %362 : vector<4x1xf32> to vector<4x256xf32>
    %365 = arith.mulf %363, %364 : vector<4x256xf32>
    %c10 = arith.constant 10 : index
    %c0_54 = arith.constant 0 : index
    %c0_55 = arith.constant 0 : index
    %c0_56 = arith.constant 0 : index
    %366 = vector.load %arg2[%c10, %c0_54, %c0_55, %c0_56] : memref<18x4x4x1xf32, #tpu.memory_space<vmem>>, vector<1x4x4x1xf32>
    %367 = vector.shape_cast %366 : vector<1x4x4x1xf32> to vector<4x4x1xf32>
    %368 = vector.extract_strided_slice %334 {offsets = [0, 0], sizes = [1, 256], strides = [1, 1]} : vector<4x256xf32> to vector<1x256xf32>
    %369 = vector.extract_strided_slice %367 {offsets = [0, 0, 0], sizes = [1, 4, 1], strides = [1, 1, 1]} : vector<4x4x1xf32> to vector<1x4x1xf32>
    %370 = vector.shape_cast %369 : vector<1x4x1xf32> to vector<4x1xf32>
    %371 = vector.broadcast %368 : vector<1x256xf32> to vector<4x256xf32>
    %372 = vector.broadcast %370 : vector<4x1xf32> to vector<4x256xf32>
    %373 = arith.mulf %371, %372 : vector<4x256xf32>
    %374 = arith.addf %347, %373 : vector<4x256xf32>
    %375 = vector.extract_strided_slice %334 {offsets = [1, 0], sizes = [1, 256], strides = [1, 1]} : vector<4x256xf32> to vector<1x256xf32>
    %376 = vector.extract_strided_slice %367 {offsets = [1, 0, 0], sizes = [1, 4, 1], strides = [1, 1, 1]} : vector<4x4x1xf32> to vector<1x4x1xf32>
    %377 = vector.shape_cast %376 : vector<1x4x1xf32> to vector<4x1xf32>
    %378 = vector.broadcast %375 : vector<1x256xf32> to vector<4x256xf32>
    %379 = vector.broadcast %377 : vector<4x1xf32> to vector<4x256xf32>
    %380 = arith.mulf %378, %379 : vector<4x256xf32>
    %381 = arith.addf %353, %380 : vector<4x256xf32>
    %382 = vector.extract_strided_slice %334 {offsets = [2, 0], sizes = [1, 256], strides = [1, 1]} : vector<4x256xf32> to vector<1x256xf32>
    %383 = vector.extract_strided_slice %367 {offsets = [2, 0, 0], sizes = [1, 4, 1], strides = [1, 1, 1]} : vector<4x4x1xf32> to vector<1x4x1xf32>
    %384 = vector.shape_cast %383 : vector<1x4x1xf32> to vector<4x1xf32>
    %385 = vector.broadcast %382 : vector<1x256xf32> to vector<4x256xf32>
    %386 = vector.broadcast %384 : vector<4x1xf32> to vector<4x256xf32>
    %387 = arith.mulf %385, %386 : vector<4x256xf32>
    %388 = arith.addf %359, %387 : vector<4x256xf32>
    %389 = vector.extract_strided_slice %334 {offsets = [3, 0], sizes = [1, 256], strides = [1, 1]} : vector<4x256xf32> to vector<1x256xf32>
    %390 = vector.extract_strided_slice %367 {offsets = [3, 0, 0], sizes = [1, 4, 1], strides = [1, 1, 1]} : vector<4x4x1xf32> to vector<1x4x1xf32>
    %391 = vector.shape_cast %390 : vector<1x4x1xf32> to vector<4x1xf32>
    %392 = vector.broadcast %389 : vector<1x256xf32> to vector<4x256xf32>
    %393 = vector.broadcast %391 : vector<4x1xf32> to vector<4x256xf32>
    %394 = arith.mulf %392, %393 : vector<4x256xf32>
    %395 = arith.addf %365, %394 : vector<4x256xf32>
    %c11 = arith.constant 11 : index
    %c0_57 = arith.constant 0 : index
    %c0_58 = arith.constant 0 : index
    %c0_59 = arith.constant 0 : index
    %396 = vector.load %arg2[%c11, %c0_57, %c0_58, %c0_59] : memref<18x4x4x1xf32, #tpu.memory_space<vmem>>, vector<1x4x4x1xf32>
    %397 = vector.shape_cast %396 : vector<1x4x4x1xf32> to vector<4x4x1xf32>
    %398 = vector.extract_strided_slice %339 {offsets = [0, 0], sizes = [1, 256], strides = [1, 1]} : vector<4x256xf32> to vector<1x256xf32>
    %399 = vector.extract_strided_slice %397 {offsets = [0, 0, 0], sizes = [1, 4, 1], strides = [1, 1, 1]} : vector<4x4x1xf32> to vector<1x4x1xf32>
    %400 = vector.shape_cast %399 : vector<1x4x1xf32> to vector<4x1xf32>
    %401 = vector.broadcast %398 : vector<1x256xf32> to vector<4x256xf32>
    %402 = vector.broadcast %400 : vector<4x1xf32> to vector<4x256xf32>
    %403 = arith.mulf %401, %402 : vector<4x256xf32>
    %404 = arith.addf %374, %403 : vector<4x256xf32>
    %405 = vector.extract_strided_slice %339 {offsets = [1, 0], sizes = [1, 256], strides = [1, 1]} : vector<4x256xf32> to vector<1x256xf32>
    %406 = vector.extract_strided_slice %397 {offsets = [1, 0, 0], sizes = [1, 4, 1], strides = [1, 1, 1]} : vector<4x4x1xf32> to vector<1x4x1xf32>
    %407 = vector.shape_cast %406 : vector<1x4x1xf32> to vector<4x1xf32>
    %408 = vector.broadcast %405 : vector<1x256xf32> to vector<4x256xf32>
    %409 = vector.broadcast %407 : vector<4x1xf32> to vector<4x256xf32>
    %410 = arith.mulf %408, %409 : vector<4x256xf32>
    %411 = arith.addf %381, %410 : vector<4x256xf32>
    %412 = vector.extract_strided_slice %339 {offsets = [2, 0], sizes = [1, 256], strides = [1, 1]} : vector<4x256xf32> to vector<1x256xf32>
    %413 = vector.extract_strided_slice %397 {offsets = [2, 0, 0], sizes = [1, 4, 1], strides = [1, 1, 1]} : vector<4x4x1xf32> to vector<1x4x1xf32>
    %414 = vector.shape_cast %413 : vector<1x4x1xf32> to vector<4x1xf32>
    %415 = vector.broadcast %412 : vector<1x256xf32> to vector<4x256xf32>
    %416 = vector.broadcast %414 : vector<4x1xf32> to vector<4x256xf32>
    %417 = arith.mulf %415, %416 : vector<4x256xf32>
    %418 = arith.addf %388, %417 : vector<4x256xf32>
    %419 = vector.extract_strided_slice %339 {offsets = [3, 0], sizes = [1, 256], strides = [1, 1]} : vector<4x256xf32> to vector<1x256xf32>
    %420 = vector.extract_strided_slice %397 {offsets = [3, 0, 0], sizes = [1, 4, 1], strides = [1, 1, 1]} : vector<4x4x1xf32> to vector<1x4x1xf32>
    %421 = vector.shape_cast %420 : vector<1x4x1xf32> to vector<4x1xf32>
    %422 = vector.broadcast %419 : vector<1x256xf32> to vector<4x256xf32>
    %423 = vector.broadcast %421 : vector<4x1xf32> to vector<4x256xf32>
    %424 = arith.mulf %422, %423 : vector<4x256xf32>
    %425 = arith.addf %395, %424 : vector<4x256xf32>
    %c1_i32_60 = arith.constant 1 : i32
    %426 = tpu.dynamic_rotate %331 by %c1_i32_60 dim 1 : vector<4x256xf32>, i32 -> vector<4x256xf32>
    %c255_i32_61 = arith.constant 255 : i32
    %427 = tpu.dynamic_rotate %331 by %c255_i32_61 dim 1 : vector<4x256xf32>, i32 -> vector<4x256xf32>
    %428 = arith.select %22, %427, %426 : vector<4x256xi1>, vector<4x256xf32>
    %429 = arith.select %24, %426, %427 : vector<4x256xi1>, vector<4x256xf32>
    %c12 = arith.constant 12 : index
    %c0_62 = arith.constant 0 : index
    %c0_63 = arith.constant 0 : index
    %c0_64 = arith.constant 0 : index
    %430 = vector.load %arg2[%c12, %c0_62, %c0_63, %c0_64] : memref<18x4x4x1xf32, #tpu.memory_space<vmem>>, vector<1x4x4x1xf32>
    %431 = vector.shape_cast %430 : vector<1x4x4x1xf32> to vector<4x4x1xf32>
    %432 = vector.extract_strided_slice %428 {offsets = [0, 0], sizes = [1, 256], strides = [1, 1]} : vector<4x256xf32> to vector<1x256xf32>
    %433 = vector.extract_strided_slice %431 {offsets = [0, 0, 0], sizes = [1, 4, 1], strides = [1, 1, 1]} : vector<4x4x1xf32> to vector<1x4x1xf32>
    %434 = vector.shape_cast %433 : vector<1x4x1xf32> to vector<4x1xf32>
    %435 = vector.broadcast %432 : vector<1x256xf32> to vector<4x256xf32>
    %436 = vector.broadcast %434 : vector<4x1xf32> to vector<4x256xf32>
    %437 = arith.mulf %435, %436 : vector<4x256xf32>
    %438 = arith.addf %404, %437 : vector<4x256xf32>
    %439 = vector.extract_strided_slice %428 {offsets = [1, 0], sizes = [1, 256], strides = [1, 1]} : vector<4x256xf32> to vector<1x256xf32>
    %440 = vector.extract_strided_slice %431 {offsets = [1, 0, 0], sizes = [1, 4, 1], strides = [1, 1, 1]} : vector<4x4x1xf32> to vector<1x4x1xf32>
    %441 = vector.shape_cast %440 : vector<1x4x1xf32> to vector<4x1xf32>
    %442 = vector.broadcast %439 : vector<1x256xf32> to vector<4x256xf32>
    %443 = vector.broadcast %441 : vector<4x1xf32> to vector<4x256xf32>
    %444 = arith.mulf %442, %443 : vector<4x256xf32>
    %445 = arith.addf %411, %444 : vector<4x256xf32>
    %446 = vector.extract_strided_slice %428 {offsets = [2, 0], sizes = [1, 256], strides = [1, 1]} : vector<4x256xf32> to vector<1x256xf32>
    %447 = vector.extract_strided_slice %431 {offsets = [2, 0, 0], sizes = [1, 4, 1], strides = [1, 1, 1]} : vector<4x4x1xf32> to vector<1x4x1xf32>
    %448 = vector.shape_cast %447 : vector<1x4x1xf32> to vector<4x1xf32>
    %449 = vector.broadcast %446 : vector<1x256xf32> to vector<4x256xf32>
    %450 = vector.broadcast %448 : vector<4x1xf32> to vector<4x256xf32>
    %451 = arith.mulf %449, %450 : vector<4x256xf32>
    %452 = arith.addf %418, %451 : vector<4x256xf32>
    %453 = vector.extract_strided_slice %428 {offsets = [3, 0], sizes = [1, 256], strides = [1, 1]} : vector<4x256xf32> to vector<1x256xf32>
    %454 = vector.extract_strided_slice %431 {offsets = [3, 0, 0], sizes = [1, 4, 1], strides = [1, 1, 1]} : vector<4x4x1xf32> to vector<1x4x1xf32>
    %455 = vector.shape_cast %454 : vector<1x4x1xf32> to vector<4x1xf32>
    %456 = vector.broadcast %453 : vector<1x256xf32> to vector<4x256xf32>
    %457 = vector.broadcast %455 : vector<4x1xf32> to vector<4x256xf32>
    %458 = arith.mulf %456, %457 : vector<4x256xf32>
    %459 = arith.addf %425, %458 : vector<4x256xf32>
    %c13 = arith.constant 13 : index
    %c0_65 = arith.constant 0 : index
    %c0_66 = arith.constant 0 : index
    %c0_67 = arith.constant 0 : index
    %460 = vector.load %arg2[%c13, %c0_65, %c0_66, %c0_67] : memref<18x4x4x1xf32, #tpu.memory_space<vmem>>, vector<1x4x4x1xf32>
    %461 = vector.shape_cast %460 : vector<1x4x4x1xf32> to vector<4x4x1xf32>
    %462 = vector.extract_strided_slice %331 {offsets = [0, 0], sizes = [1, 256], strides = [1, 1]} : vector<4x256xf32> to vector<1x256xf32>
    %463 = vector.extract_strided_slice %461 {offsets = [0, 0, 0], sizes = [1, 4, 1], strides = [1, 1, 1]} : vector<4x4x1xf32> to vector<1x4x1xf32>
    %464 = vector.shape_cast %463 : vector<1x4x1xf32> to vector<4x1xf32>
    %465 = vector.broadcast %462 : vector<1x256xf32> to vector<4x256xf32>
    %466 = vector.broadcast %464 : vector<4x1xf32> to vector<4x256xf32>
    %467 = arith.mulf %465, %466 : vector<4x256xf32>
    %468 = arith.addf %438, %467 : vector<4x256xf32>
    %469 = vector.extract_strided_slice %331 {offsets = [1, 0], sizes = [1, 256], strides = [1, 1]} : vector<4x256xf32> to vector<1x256xf32>
    %470 = vector.extract_strided_slice %461 {offsets = [1, 0, 0], sizes = [1, 4, 1], strides = [1, 1, 1]} : vector<4x4x1xf32> to vector<1x4x1xf32>
    %471 = vector.shape_cast %470 : vector<1x4x1xf32> to vector<4x1xf32>
    %472 = vector.broadcast %469 : vector<1x256xf32> to vector<4x256xf32>
    %473 = vector.broadcast %471 : vector<4x1xf32> to vector<4x256xf32>
    %474 = arith.mulf %472, %473 : vector<4x256xf32>
    %475 = arith.addf %445, %474 : vector<4x256xf32>
    %476 = vector.extract_strided_slice %331 {offsets = [2, 0], sizes = [1, 256], strides = [1, 1]} : vector<4x256xf32> to vector<1x256xf32>
    %477 = vector.extract_strided_slice %461 {offsets = [2, 0, 0], sizes = [1, 4, 1], strides = [1, 1, 1]} : vector<4x4x1xf32> to vector<1x4x1xf32>
    %478 = vector.shape_cast %477 : vector<1x4x1xf32> to vector<4x1xf32>
    %479 = vector.broadcast %476 : vector<1x256xf32> to vector<4x256xf32>
    %480 = vector.broadcast %478 : vector<4x1xf32> to vector<4x256xf32>
    %481 = arith.mulf %479, %480 : vector<4x256xf32>
    %482 = arith.addf %452, %481 : vector<4x256xf32>
    %483 = vector.extract_strided_slice %331 {offsets = [3, 0], sizes = [1, 256], strides = [1, 1]} : vector<4x256xf32> to vector<1x256xf32>
    %484 = vector.extract_strided_slice %461 {offsets = [3, 0, 0], sizes = [1, 4, 1], strides = [1, 1, 1]} : vector<4x4x1xf32> to vector<1x4x1xf32>
    %485 = vector.shape_cast %484 : vector<1x4x1xf32> to vector<4x1xf32>
    %486 = vector.broadcast %483 : vector<1x256xf32> to vector<4x256xf32>
    %487 = vector.broadcast %485 : vector<4x1xf32> to vector<4x256xf32>
    %488 = arith.mulf %486, %487 : vector<4x256xf32>
    %489 = arith.addf %459, %488 : vector<4x256xf32>
    %c14 = arith.constant 14 : index
    %c0_68 = arith.constant 0 : index
    %c0_69 = arith.constant 0 : index
    %c0_70 = arith.constant 0 : index
    %490 = vector.load %arg2[%c14, %c0_68, %c0_69, %c0_70] : memref<18x4x4x1xf32, #tpu.memory_space<vmem>>, vector<1x4x4x1xf32>
    %491 = vector.shape_cast %490 : vector<1x4x4x1xf32> to vector<4x4x1xf32>
    %492 = vector.extract_strided_slice %429 {offsets = [0, 0], sizes = [1, 256], strides = [1, 1]} : vector<4x256xf32> to vector<1x256xf32>
    %493 = vector.extract_strided_slice %491 {offsets = [0, 0, 0], sizes = [1, 4, 1], strides = [1, 1, 1]} : vector<4x4x1xf32> to vector<1x4x1xf32>
    %494 = vector.shape_cast %493 : vector<1x4x1xf32> to vector<4x1xf32>
    %495 = vector.broadcast %492 : vector<1x256xf32> to vector<4x256xf32>
    %496 = vector.broadcast %494 : vector<4x1xf32> to vector<4x256xf32>
    %497 = arith.mulf %495, %496 : vector<4x256xf32>
    %498 = arith.addf %468, %497 : vector<4x256xf32>
    %499 = vector.extract_strided_slice %429 {offsets = [1, 0], sizes = [1, 256], strides = [1, 1]} : vector<4x256xf32> to vector<1x256xf32>
    %500 = vector.extract_strided_slice %491 {offsets = [1, 0, 0], sizes = [1, 4, 1], strides = [1, 1, 1]} : vector<4x4x1xf32> to vector<1x4x1xf32>
    %501 = vector.shape_cast %500 : vector<1x4x1xf32> to vector<4x1xf32>
    %502 = vector.broadcast %499 : vector<1x256xf32> to vector<4x256xf32>
    %503 = vector.broadcast %501 : vector<4x1xf32> to vector<4x256xf32>
    %504 = arith.mulf %502, %503 : vector<4x256xf32>
    %505 = arith.addf %475, %504 : vector<4x256xf32>
    %506 = vector.extract_strided_slice %429 {offsets = [2, 0], sizes = [1, 256], strides = [1, 1]} : vector<4x256xf32> to vector<1x256xf32>
    %507 = vector.extract_strided_slice %491 {offsets = [2, 0, 0], sizes = [1, 4, 1], strides = [1, 1, 1]} : vector<4x4x1xf32> to vector<1x4x1xf32>
    %508 = vector.shape_cast %507 : vector<1x4x1xf32> to vector<4x1xf32>
    %509 = vector.broadcast %506 : vector<1x256xf32> to vector<4x256xf32>
    %510 = vector.broadcast %508 : vector<4x1xf32> to vector<4x256xf32>
    %511 = arith.mulf %509, %510 : vector<4x256xf32>
    %512 = arith.addf %482, %511 : vector<4x256xf32>
    %513 = vector.extract_strided_slice %429 {offsets = [3, 0], sizes = [1, 256], strides = [1, 1]} : vector<4x256xf32> to vector<1x256xf32>
    %514 = vector.extract_strided_slice %491 {offsets = [3, 0, 0], sizes = [1, 4, 1], strides = [1, 1, 1]} : vector<4x4x1xf32> to vector<1x4x1xf32>
    %515 = vector.shape_cast %514 : vector<1x4x1xf32> to vector<4x1xf32>
    %516 = vector.broadcast %513 : vector<1x256xf32> to vector<4x256xf32>
    %517 = vector.broadcast %515 : vector<4x1xf32> to vector<4x256xf32>
    %518 = arith.mulf %516, %517 : vector<4x256xf32>
    %519 = arith.addf %489, %518 : vector<4x256xf32>
    %c1_i32_71 = arith.constant 1 : i32
    %520 = tpu.dynamic_rotate %335 by %c1_i32_71 dim 1 : vector<4x256xf32>, i32 -> vector<4x256xf32>
    %c255_i32_72 = arith.constant 255 : i32
    %521 = tpu.dynamic_rotate %335 by %c255_i32_72 dim 1 : vector<4x256xf32>, i32 -> vector<4x256xf32>
    %522 = arith.select %22, %521, %520 : vector<4x256xi1>, vector<4x256xf32>
    %523 = arith.select %24, %520, %521 : vector<4x256xi1>, vector<4x256xf32>
    %c15 = arith.constant 15 : index
    %c0_73 = arith.constant 0 : index
    %c0_74 = arith.constant 0 : index
    %c0_75 = arith.constant 0 : index
    %524 = vector.load %arg2[%c15, %c0_73, %c0_74, %c0_75] : memref<18x4x4x1xf32, #tpu.memory_space<vmem>>, vector<1x4x4x1xf32>
    %525 = vector.shape_cast %524 : vector<1x4x4x1xf32> to vector<4x4x1xf32>
    %526 = vector.extract_strided_slice %522 {offsets = [0, 0], sizes = [1, 256], strides = [1, 1]} : vector<4x256xf32> to vector<1x256xf32>
    %527 = vector.extract_strided_slice %525 {offsets = [0, 0, 0], sizes = [1, 4, 1], strides = [1, 1, 1]} : vector<4x4x1xf32> to vector<1x4x1xf32>
    %528 = vector.shape_cast %527 : vector<1x4x1xf32> to vector<4x1xf32>
    %529 = vector.broadcast %526 : vector<1x256xf32> to vector<4x256xf32>
    %530 = vector.broadcast %528 : vector<4x1xf32> to vector<4x256xf32>
    %531 = arith.mulf %529, %530 : vector<4x256xf32>
    %532 = arith.addf %498, %531 : vector<4x256xf32>
    %533 = vector.extract_strided_slice %522 {offsets = [1, 0], sizes = [1, 256], strides = [1, 1]} : vector<4x256xf32> to vector<1x256xf32>
    %534 = vector.extract_strided_slice %525 {offsets = [1, 0, 0], sizes = [1, 4, 1], strides = [1, 1, 1]} : vector<4x4x1xf32> to vector<1x4x1xf32>
    %535 = vector.shape_cast %534 : vector<1x4x1xf32> to vector<4x1xf32>
    %536 = vector.broadcast %533 : vector<1x256xf32> to vector<4x256xf32>
    %537 = vector.broadcast %535 : vector<4x1xf32> to vector<4x256xf32>
    %538 = arith.mulf %536, %537 : vector<4x256xf32>
    %539 = arith.addf %505, %538 : vector<4x256xf32>
    %540 = vector.extract_strided_slice %522 {offsets = [2, 0], sizes = [1, 256], strides = [1, 1]} : vector<4x256xf32> to vector<1x256xf32>
    %541 = vector.extract_strided_slice %525 {offsets = [2, 0, 0], sizes = [1, 4, 1], strides = [1, 1, 1]} : vector<4x4x1xf32> to vector<1x4x1xf32>
    %542 = vector.shape_cast %541 : vector<1x4x1xf32> to vector<4x1xf32>
    %543 = vector.broadcast %540 : vector<1x256xf32> to vector<4x256xf32>
    %544 = vector.broadcast %542 : vector<4x1xf32> to vector<4x256xf32>
    %545 = arith.mulf %543, %544 : vector<4x256xf32>
    %546 = arith.addf %512, %545 : vector<4x256xf32>
    %547 = vector.extract_strided_slice %522 {offsets = [3, 0], sizes = [1, 256], strides = [1, 1]} : vector<4x256xf32> to vector<1x256xf32>
    %548 = vector.extract_strided_slice %525 {offsets = [3, 0, 0], sizes = [1, 4, 1], strides = [1, 1, 1]} : vector<4x4x1xf32> to vector<1x4x1xf32>
    %549 = vector.shape_cast %548 : vector<1x4x1xf32> to vector<4x1xf32>
    %550 = vector.broadcast %547 : vector<1x256xf32> to vector<4x256xf32>
    %551 = vector.broadcast %549 : vector<4x1xf32> to vector<4x256xf32>
    %552 = arith.mulf %550, %551 : vector<4x256xf32>
    %553 = arith.addf %519, %552 : vector<4x256xf32>
    %c16 = arith.constant 16 : index
    %c0_76 = arith.constant 0 : index
    %c0_77 = arith.constant 0 : index
    %c0_78 = arith.constant 0 : index
    %554 = vector.load %arg2[%c16, %c0_76, %c0_77, %c0_78] : memref<18x4x4x1xf32, #tpu.memory_space<vmem>>, vector<1x4x4x1xf32>
    %555 = vector.shape_cast %554 : vector<1x4x4x1xf32> to vector<4x4x1xf32>
    %556 = vector.extract_strided_slice %335 {offsets = [0, 0], sizes = [1, 256], strides = [1, 1]} : vector<4x256xf32> to vector<1x256xf32>
    %557 = vector.extract_strided_slice %555 {offsets = [0, 0, 0], sizes = [1, 4, 1], strides = [1, 1, 1]} : vector<4x4x1xf32> to vector<1x4x1xf32>
    %558 = vector.shape_cast %557 : vector<1x4x1xf32> to vector<4x1xf32>
    %559 = vector.broadcast %556 : vector<1x256xf32> to vector<4x256xf32>
    %560 = vector.broadcast %558 : vector<4x1xf32> to vector<4x256xf32>
    %561 = arith.mulf %559, %560 : vector<4x256xf32>
    %562 = arith.addf %532, %561 : vector<4x256xf32>
    %563 = vector.extract_strided_slice %335 {offsets = [1, 0], sizes = [1, 256], strides = [1, 1]} : vector<4x256xf32> to vector<1x256xf32>
    %564 = vector.extract_strided_slice %555 {offsets = [1, 0, 0], sizes = [1, 4, 1], strides = [1, 1, 1]} : vector<4x4x1xf32> to vector<1x4x1xf32>
    %565 = vector.shape_cast %564 : vector<1x4x1xf32> to vector<4x1xf32>
    %566 = vector.broadcast %563 : vector<1x256xf32> to vector<4x256xf32>
    %567 = vector.broadcast %565 : vector<4x1xf32> to vector<4x256xf32>
    %568 = arith.mulf %566, %567 : vector<4x256xf32>
    %569 = arith.addf %539, %568 : vector<4x256xf32>
    %570 = vector.extract_strided_slice %335 {offsets = [2, 0], sizes = [1, 256], strides = [1, 1]} : vector<4x256xf32> to vector<1x256xf32>
    %571 = vector.extract_strided_slice %555 {offsets = [2, 0, 0], sizes = [1, 4, 1], strides = [1, 1, 1]} : vector<4x4x1xf32> to vector<1x4x1xf32>
    %572 = vector.shape_cast %571 : vector<1x4x1xf32> to vector<4x1xf32>
    %573 = vector.broadcast %570 : vector<1x256xf32> to vector<4x256xf32>
    %574 = vector.broadcast %572 : vector<4x1xf32> to vector<4x256xf32>
    %575 = arith.mulf %573, %574 : vector<4x256xf32>
    %576 = arith.addf %546, %575 : vector<4x256xf32>
    %577 = vector.extract_strided_slice %335 {offsets = [3, 0], sizes = [1, 256], strides = [1, 1]} : vector<4x256xf32> to vector<1x256xf32>
    %578 = vector.extract_strided_slice %555 {offsets = [3, 0, 0], sizes = [1, 4, 1], strides = [1, 1, 1]} : vector<4x4x1xf32> to vector<1x4x1xf32>
    %579 = vector.shape_cast %578 : vector<1x4x1xf32> to vector<4x1xf32>
    %580 = vector.broadcast %577 : vector<1x256xf32> to vector<4x256xf32>
    %581 = vector.broadcast %579 : vector<4x1xf32> to vector<4x256xf32>
    %582 = arith.mulf %580, %581 : vector<4x256xf32>
    %583 = arith.addf %553, %582 : vector<4x256xf32>
    %c17 = arith.constant 17 : index
    %c0_79 = arith.constant 0 : index
    %c0_80 = arith.constant 0 : index
    %c0_81 = arith.constant 0 : index
    %584 = vector.load %arg2[%c17, %c0_79, %c0_80, %c0_81] : memref<18x4x4x1xf32, #tpu.memory_space<vmem>>, vector<1x4x4x1xf32>
    %585 = vector.shape_cast %584 : vector<1x4x4x1xf32> to vector<4x4x1xf32>
    %586 = vector.extract_strided_slice %523 {offsets = [0, 0], sizes = [1, 256], strides = [1, 1]} : vector<4x256xf32> to vector<1x256xf32>
    %587 = vector.extract_strided_slice %585 {offsets = [0, 0, 0], sizes = [1, 4, 1], strides = [1, 1, 1]} : vector<4x4x1xf32> to vector<1x4x1xf32>
    %588 = vector.shape_cast %587 : vector<1x4x1xf32> to vector<4x1xf32>
    %589 = vector.broadcast %586 : vector<1x256xf32> to vector<4x256xf32>
    %590 = vector.broadcast %588 : vector<4x1xf32> to vector<4x256xf32>
    %591 = arith.mulf %589, %590 : vector<4x256xf32>
    %592 = arith.addf %562, %591 : vector<4x256xf32>
    %593 = vector.extract_strided_slice %523 {offsets = [1, 0], sizes = [1, 256], strides = [1, 1]} : vector<4x256xf32> to vector<1x256xf32>
    %594 = vector.extract_strided_slice %585 {offsets = [1, 0, 0], sizes = [1, 4, 1], strides = [1, 1, 1]} : vector<4x4x1xf32> to vector<1x4x1xf32>
    %595 = vector.shape_cast %594 : vector<1x4x1xf32> to vector<4x1xf32>
    %596 = vector.broadcast %593 : vector<1x256xf32> to vector<4x256xf32>
    %597 = vector.broadcast %595 : vector<4x1xf32> to vector<4x256xf32>
    %598 = arith.mulf %596, %597 : vector<4x256xf32>
    %599 = arith.addf %569, %598 : vector<4x256xf32>
    %600 = vector.extract_strided_slice %523 {offsets = [2, 0], sizes = [1, 256], strides = [1, 1]} : vector<4x256xf32> to vector<1x256xf32>
    %601 = vector.extract_strided_slice %585 {offsets = [2, 0, 0], sizes = [1, 4, 1], strides = [1, 1, 1]} : vector<4x4x1xf32> to vector<1x4x1xf32>
    %602 = vector.shape_cast %601 : vector<1x4x1xf32> to vector<4x1xf32>
    %603 = vector.broadcast %600 : vector<1x256xf32> to vector<4x256xf32>
    %604 = vector.broadcast %602 : vector<4x1xf32> to vector<4x256xf32>
    %605 = arith.mulf %603, %604 : vector<4x256xf32>
    %606 = arith.addf %576, %605 : vector<4x256xf32>
    %607 = vector.extract_strided_slice %523 {offsets = [3, 0], sizes = [1, 256], strides = [1, 1]} : vector<4x256xf32> to vector<1x256xf32>
    %608 = vector.extract_strided_slice %585 {offsets = [3, 0, 0], sizes = [1, 4, 1], strides = [1, 1, 1]} : vector<4x4x1xf32> to vector<1x4x1xf32>
    %609 = vector.shape_cast %608 : vector<1x4x1xf32> to vector<4x1xf32>
    %610 = vector.broadcast %607 : vector<1x256xf32> to vector<4x256xf32>
    %611 = vector.broadcast %609 : vector<4x1xf32> to vector<4x256xf32>
    %612 = arith.mulf %610, %611 : vector<4x256xf32>
    %613 = arith.addf %583, %612 : vector<4x256xf32>
    %614 = arith.addf %592, %599 : vector<4x256xf32>
    %615 = arith.addf %606, %613 : vector<4x256xf32>
    %616 = arith.addf %614, %615 : vector<4x256xf32>
    %cst_82 = arith.constant dense<0.000000e+00> : vector<4xf32>
    %617 = vector.multi_reduction <add>, %616, %cst_82 [1] : vector<4x256xf32> to vector<4xf32>
    %618 = vector.shape_cast %617 : vector<4xf32> to vector<4x1xf32>
    %cst_83 = arith.constant 2.560000e+02 : f32
    %619 = vector.broadcast %cst_83 : f32 to vector<4x1xf32>
    %620 = arith.divf %618, %619 : vector<4x1xf32>
    %621 = arith.mulf %616, %616 : vector<4x256xf32>
    %cst_84 = arith.constant dense<0.000000e+00> : vector<4xf32>
    %622 = vector.multi_reduction <add>, %621, %cst_84 [1] : vector<4x256xf32> to vector<4xf32>
    %623 = vector.shape_cast %622 : vector<4xf32> to vector<4x1xf32>
    %cst_85 = arith.constant 2.560000e+02 : f32
    %624 = vector.broadcast %cst_85 : f32 to vector<4x1xf32>
    %625 = arith.divf %623, %624 : vector<4x1xf32>
    %626 = arith.mulf %620, %620 : vector<4x1xf32>
    %627 = arith.subf %625, %626 : vector<4x1xf32>
    %628 = vector.broadcast %620 : vector<4x1xf32> to vector<4x256xf32>
    %629 = arith.subf %616, %628 : vector<4x256xf32>
    %cst_86 = arith.constant 9.99999974E-6 : f32
    %630 = vector.broadcast %cst_86 : f32 to vector<4x1xf32>
    %631 = arith.addf %627, %630 : vector<4x1xf32>
    %632 = math.rsqrt %631 : vector<4x1xf32>
    %633 = vector.broadcast %632 : vector<4x1xf32> to vector<4x256xf32>
    %634 = arith.mulf %629, %633 : vector<4x256xf32>
    %635 = arith.addf %26, %634 : vector<4x256xf32>
    %c0_87 = arith.constant 0 : index
    %c0_88 = arith.constant 0 : index
    %c0_89 = arith.constant 0 : index
    %636 = vector.load %arg3[%c0_87, %c0_88, %c0_89] : memref<1x4x256xf32, #tpu.memory_space<vmem>>, vector<1x4x256xf32>
    %637 = vector.shape_cast %636 : vector<1x4x256xf32> to vector<4x256xf32>
    %638 = vector.shape_cast %635 : vector<4x256xf32> to vector<1x4x256xf32>
    tpu.vector_store %arg3[%c0_87, %c0_88, %c0_89], %638 {strides = array<i32>} : memref<1x4x256xf32, #tpu.memory_space<vmem>>, vector<1x4x256xf32>,
    return
  }
  func.func @transform_0(%arg0: i32) -> (i32, i32, i32) {
    %c0_i32 = arith.constant 0 : i32
    %c0_i32_0 = arith.constant 0 : i32
    %c0_i32_1 = arith.constant 0 : i32
    return %arg0, %c0_i32, %c0_i32_0 : i32, i32, i32
  }
  func.func @transform_1(%arg0: i32) -> (i32, i32, i32, i32) {
    %c0_i32 = arith.constant 0 : i32
    %c0_i32_0 = arith.constant 0 : i32
    %c0_i32_1 = arith.constant 0 : i32
    %c0_i32_2 = arith.constant 0 : i32
    %c0_i32_3 = arith.constant 0 : i32
    return %c0_i32, %c0_i32_0, %c0_i32_1, %c0_i32_2 : i32, i32, i32, i32
  }
  func.func @transform_2(%arg0: i32) -> (i32, i32, i32) {
    %c0_i32 = arith.constant 0 : i32
    %c0_i32_0 = arith.constant 0 : i32
    %c0_i32_1 = arith.constant 0 : i32
    return %arg0, %c0_i32, %c0_i32_0 : i32, i32, i32
  }
}

</mosaic_0001>

<bundles_post_ra>
// kernel: tpu_custom_call.1
= control target key start
LH: loop header
LB: loop body
LE: loop exit
PB: predicated region body
PF: predicated region fallthrough
CT: control target
= control target key end

     0   :  { %7 = vsyncpa [#allocation3], 0  ;;  %s2693_s0 = inlined_call_operand.vmem [shape: f32[2,4,256], index: 0, kind: input, shape index: {}]   ;;  %s2694_s1 = inlined_call_operand.vmem [shape: f32[18,4,4,1], index: 1, kind: input, shape index: {}]   ;;  %s2695_s2 = inlined_call_operand.hbm [shape: f32[2,4,256], index: 2, kind: output, shape index: {}]  }
   0x1   :  { %9 = vsyncpa [#allocation3 + $0x1], 0  ;;  %s1599_s9 = smov 0   ;;  %s1601_s10 = smov 0  }
   0x2   :  { %s1603_s11 = smov 0   ;;  %s1605_s12 = smov 0  }
   0x3 LB: > { %s1620_s13 = sadd.s32 4294967295, %s1576_s12   ;;  %s1378_s14 = sadd.s32 4294967294, %s1576_s12   ;;  %s1576_s12 = sphi %s1605_s12, %s2802_s12   ;;  %s1572_s11 = sphi %s1603_s11, %s2801_s11   ;;  %s1568_s10 = sphi %s1601_s10, %s2800_s10   ;;  %s1564_s9 = sphi %s1599_s9, %s2799_s9  }
   0x4   : > { %s1624_s15 = sadd.s32 1, %s1576_s12   ;;  %s69_s16 = sadd.s32 1, %s1572_s11 }
   0x5   : > { %s66_s17 = ssub.s32 %s1576_s12, %s1624_s15  ;;  %p79_p0 = scmp.ne.s32.totalorder %s1572_s11, %s1568_s10 }
   0x6   : > { %p67_p1 = scmp.eq.s32.totalorder %s66_s17, 0  ;;  %p80_p2 = scmp.eq.s32.totalorder %s1620_s13, 1 }
   0x7   : > { %p85_p3 = scmp.ne.s32.totalorder %s1568_s10, %s1564_s9  ;;  %p86_p4 = scmp.eq.s32.totalorder %s1378_s14, 1 }
   0x8   : > { %s1635_s18 = scalar_select %p67_p1, %s1572_s11, %s69_s16  }
   0x9   : > { %p1637_p5 = por %p80_p2, %p79_p0  ;;  %p1641_p6 = por %p86_p4, %p85_p3 }
   0xa   : > { %p1381_p7 = scmp.ge.s32.totalorder %s1576_s12, 1  ;;  %p115_p8 = scmp.lt.s32.totalorder %s1576_s12, 3 }
   0xc   : > { %p116_p9 = pnand %p1381_p7, %p115_p8 }
   0xe   : > { %119 = sbr.rel (%p116_p9) target bundleno = 947 (0x3b3), region = 28 }
  0x13   : > { %v224_v0 = vld [vmem:[%s2694_s1] sm:$0xf]  ;;  %p137_p10 = scmp.lt.s32.totalorder %s1620_s13, 1  ;;  %v1578_v1 = vmov 0   ;;  %v226_v2 = vld [vmem:[%s2694_s1 + $0x8] sm:$0xf]  ;;  %v142_v40 = vlaneseq }
  0x14   : > { %1505 = vset.pattern.permute.xlu2 %v1578_v1  ;;  %1507 = vset.pattern.permute.xlu1 %v1578_v1  ;;  %v227_v4 = vld [vmem:[%s2694_s1 + $0xc] sm:$0xf]  ;;  %s1579_s4 = smov 16   ;;  %v1386_v7 = vld [vmem:[%s2694_s1 + $0x14] sm:$0xf]  ;;  %s1580_s7 = smov 112  }
  0x15   : > { %232 = vperm.xlu2 %1505, %v224_v0   ;;  %250 = vperm.xlu1 %1507, %v226_v2   ;;  %s138_s25 = scalar_select %p137_p10, %s1620_s13, 1  ;;  %v1389_v10 = vld [vmem:[%s2694_s1 + $0x20] sm:$0xf]  ;;  %v225_v11 = vld [vmem:[%s2694_s1 + $0x4] sm:$0xf]  ;;  %v1756_v43 = vand.u32 127, %v142_v40 }
  0x16   : > { %1506 = vset.pattern.permute.xlu0 %v1578_v1  ;;  %v1392_v14 = vld [vmem:[%s2694_s1 + $0x2c] sm:$0xf]  ;;  %v1387_v15 = vld [vmem:[%s2694_s1 + $0x18] sm:$0xf]  ;;  %v1385_v16 = vld [vmem:[%s2694_s1 + $0x10] sm:$0xf] }
  0x17   : > { %s1458_s26 = sshll.u32 %s138_s25, 3  ;;  %s1581_s27 = smov 127   ;;  %v1390_v18 = vld [vmem:[%s2694_s1 + $0x24] sm:$0xf]  ;;  %v1388_v19 = vld [vmem:[%s2694_s1 + $0x1c] sm:$0xf] }
  0x18   : > { %s141_s29 = scalar_lea.vmem %s2693_s0, %s1458_s26  ;;  %v1394_v20 = vld [vmem:[%s2694_s1 + $0x34] sm:$0xf]  ;;  %v1391_v21 = vld [vmem:[%s2694_s1 + $0x28] sm:$0xf]  ;;  %s1582_s16 = smov 1   ;;  %vm169_vm0 = vcmp.lt.s32.totalorder %v1756_v43, 16 }
  0x19   : > { %v1658_v3 = vld [vmem:[%s141_s29] sm:$0xff]  ;;  %v1400_v24 = vld [vmem:[%s2694_s1 + $0x4c] sm:$0xf]  ;;  %v1393_v25 = vld [vmem:[%s2694_s1 + $0x30] sm:$0xf]  ;;  %vm199_vm1 = vcmp.lt.s32.totalorder %v1756_v43, 112 }
  0x1a   : > { %2715 = vst [vmem:[#allocation5_spill] sm:$0xff] %v1658_v3  ;;  %v1397_v22 = vld [vmem:[%s2694_s1 + $0x40] sm:$0xf]  ;;  %v1395_v26 = vld [vmem:[%s2694_s1 + $0x38] sm:$0xf]  ;;  %vm210_vm3 = vcmp.lt.s32.totalorder %v1756_v43, 1 }
  0x1b   : > { %179 = vst [vmem:[#allocation1] ss:$2 sm:$0xff] %v1658_v3  ;;  %v1403_v27 = vld [vmem:[%s2694_s1 + $0x58] sm:$0xf]  ;;  %v1396_v28 = vld [vmem:[%s2694_s1 + $0x3c] sm:$0xf] }
  0x1c   : > { %v1398_v29 = vld [vmem:[%s2694_s1 + $0x44] sm:$0xf]  ;;  %v1405_v30 = vld [vmem:[%s2694_s1 + $0x60] sm:$0xf]  ;;  %v1399_v31 = vld [vmem:[%s2694_s1 + $0x48] sm:$0xf] }
  0x1d   : > { %259 = vperm.xlu2 %1505, %v227_v4   ;;  %v1401_v32 = vld [vmem:[%s2694_s1 + $0x50] sm:$0xf]  ;;  %v1408_v33 = vld [vmem:[%s2694_s1 + $0x6c] sm:$0xf]  ;;  %v1402_v34 = vld [vmem:[%s2694_s1 + $0x54] sm:$0xf] }
  0x1e   : > { %v1404_v35 = vld [vmem:[%s2694_s1 + $0x5c] sm:$0xf]  ;;  %v1407_v36 = vld [vmem:[%s2694_s1 + $0x68] sm:$0xf]  ;;  %v1406_v37 = vld [vmem:[%s2694_s1 + $0x64] sm:$0xf] }
  0x1f   : > { %v1410_v62 = vld [vmem:[%s2694_s1 + $0x74] sm:$0xf]  ;;  %v1411_v1 = vld [vmem:[%s2694_s1 + $0x78] sm:$0xf]  ;;  %vm217_vm4 = vcmp.lt.s32.totalorder %v1756_v43, 127  ;;  %vm720_vm9 = vcmask 1043456  }
  0x20   : > { %s1459_s5 = sshll.u32 %s1620_s13, 3  ;;  %s1534_s25 = scalar_lea.hbm %s2695_s2, 16 }
  0x21   : > { %s1314_s14 = scalar_lea.hbm %s2695_s2, %s1459_s5 }
  0x22   : > { %v180_v5 = vld.sshfl [vmem:[#allocation1] sm:$0xff pattern:$0x75316420]  ;;  %v181_v6 = vld.sshfl [vmem:[#allocation1 + $0x8] sm:$0xff pattern:$0x75316420] }
  0x23   : > { %184 = vrot.lane.b32.xlu0 %v180_v5, %s1579_s4  ;;  %190 = vst [vmem:[#allocation1] ss:$2 sm:$0xff] %v1658_v3  ;;  %s1318_s21 = sshll.u32 %s1314_s14, 4  ;;  %s1319_s21 = int_to_ptr.hbm [resolvable:$true] %s1318_s21 }
  0x25   : > { %284 = vperm.xlu2 %1505, %v1386_v7   ;;  %v1801_v7 = vadd.s32 128, %v1756_v43 }
  0x27   : > { %2717 = vst [vmem:[#allocation7_spill] sm:$0xff] %v1801_v7  ;;  %vm172_vm2 = vcmp.ge.s32.totalorder %v1801_v7, 240 }
  0x2a   : > { %v191_v8 = vld.sshfl [vmem:[#allocation1] sm:$0xff pattern:$0x75316420]  ;;  %v192_v9 = vld.sshfl [vmem:[#allocation1 + $0x8] sm:$0xff pattern:$0x75316420] }
  0x2b   : > { %186 = vrot.lane.b32.xlu0 %v181_v6, %s1579_s4  ;;  %195 = vrot.lane.b32.xlu1 %v191_v8, %s1580_s7  ;;  %362 = vst [vmem:[#allocation1] ss:$2 sm:$0xff] %v1658_v3 }
  0x2d   : > { %322 = vperm.xlu2 %1505, %v1389_v10  }
  0x32   : > { %v363_v12 = vld.sshfl [vmem:[#allocation1] sm:$0xff pattern:$0x75316420]  ;;  %v364_v13 = vld.sshfl [vmem:[#allocation1 + $0x8] sm:$0xff pattern:$0x75316420] }
  0x33   : > { %241 = vperm.xlu0 %1506, %v225_v11   ;;  %197 = vrot.lane.b32.xlu1 %v192_v9, %s1580_s7  ;;  %373 = vst [vmem:[#allocation1] ss:$2 sm:$0xff] %v1658_v3 }
  0x35   : > { %355 = vperm.xlu2 %1505, %v1392_v14  }
  0x3a   : > { %v374_v17 = vld.sshfl [vmem:[#allocation1] sm:$0xff pattern:$0x75316420]  ;;  %v375_v23 = vld.sshfl [vmem:[#allocation1 + $0x8] sm:$0xff pattern:$0x75316420] }
  0x3b   : > { %295 = vperm.xlu0 %1506, %v1387_v15   ;;  %273 = vperm.xlu1 %1507, %v1385_v16  }
  0x3d   : > { %378 = vrot.lane.b32.xlu2 %v374_v17, %s1581_s27 }
  0x43   : > { %333 = vperm.xlu0 %1506, %v1390_v18   ;;  %306 = vperm.xlu1 %1507, %v1388_v19   ;;  %v1412_v19 = vld [vmem:[%s2694_s1 + $0x7c] sm:$0xf] }
  0x45   : > { %408 = vperm.xlu2 %1505, %v1394_v20  }
  0x4b   : > { %344 = vperm.xlu1 %1507, %v1391_v21   ;;  %367 = vrot.lane.b32.xlu0 %v363_v12, %s1582_s16  ;;  %v1413_v12 = vld [vmem:[%s2694_s1 + $0x80] sm:$0xf] }
  0x4d   : > { %450 = vperm.xlu2 %1505, %v1397_v22   ;;  %v1414_v22 = vld [vmem:[%s2694_s1 + $0x84] sm:$0xf] }
  0x53   : > { %369 = vrot.lane.b32.xlu1 %v364_v13, %s1582_s16  ;;  %380 = vrot.lane.b32.xlu0 %v375_v23, %s1581_s27  ;;  %v1409_v13 = vld [vmem:[%s2694_s1 + $0x70] sm:$0xf] }
  0x55   : > { %495 = vperm.xlu2 %1505, %v1400_v24   ;;  %v156_v24 = vand.u32 15, %v1801_v7  ;;  %v472_v7 = vperm.slane %v1658_v3, 2 }
  0x57   : > { %vm1841_vm5 = vcmp.eq.s32.totalorder %v156_v24, 0  ;;  %vm1845_vm6 = vcmp.eq.s32.totalorder %v156_v24, 15  ;;  %v1427_v24 = vld [vmem:[%s2694_s1 + $0xb8] sm:$0xf] }
  0x5b   : > { %397 = vperm.xlu1 %1507, %v1393_v25   ;;  %419 = vperm.xlu0 %1506, %v1395_v26   ;;  %v149_v25 = vand.u32 15, %v1756_v43 }
  0x5d   : > { %533 = vperm.xlu2 %1505, %v1403_v27   ;;  %vm1849_vm7 = vcmp.eq.s32.totalorder %v149_v25, 0  ;;  %vm1853_vm8 = vcmp.eq.s32.totalorder %v149_v25, 15 }
  0x63   : > { %430 = vperm.xlu1 %1507, %v1396_v28   ;;  %465 = vperm.xlu0 %1506, %v1398_v29  }
  0x65   : > { %576 = vperm.xlu2 %1505, %v1405_v30   ;;  %v1416_v30 = vld [vmem:[%s2694_s1 + $0x8c] sm:$0xf] }
  0x6b   : > { %480 = vperm.xlu1 %1507, %v1399_v31   ;;  %511 = vperm.xlu0 %1506, %v1401_v32  }
  0x6d   : > { %609 = vperm.xlu2 %1505, %v1408_v33   ;;  %v1415_v33 = vld [vmem:[%s2694_s1 + $0x88] sm:$0xf] }
  0x6f   : > { %v1750_v38 = vpop.permute.xlu2 %232 }
  0x73   : > { %522 = vperm.xlu1 %1507, %v1402_v34   ;;  %544 = vperm.xlu0 %1506, %v1404_v35   ;;  %v1419_v34 = vld [vmem:[%s2694_s1 + $0x98] sm:$0xf] }
  0x77   : > { %v1754_v42 = vpop.permute.xlu2 %259 }
  0x7b   : > { %598 = vperm.xlu1 %1507, %v1407_v36   ;;  %587 = vperm.xlu0 %1506, %v1406_v37  }
  0x7f   : > { %v285_v48 = vpop.permute.xlu2 %284 }
  0x87   : > { %v1752_v39 = vpop.permute.xlu1 %250  ;;  %v1782_v56 = vpop.permute.xlu2 %322 }
  0x8f   : > { %v1805_v8 = vpop.permute.xlu2 %355 }
  0x95   : > { %v185_v41 = vpop.permute.xlu0 %184 }
  0x97   : > { %v379_v23 = vpop.permute.xlu2 %378 }
  0x9d   : > { %v187_v44 = vpop.permute.xlu0 %186  ;;  %v196_v45 = vpop.permute.xlu1 %195 }
  0x9e   : > { %v188_v46 = vsel %vm169_vm0, %v185_v41, %v187_v44  ;;  %v189_v52 = vsel %vm169_vm0, %v187_v44, %v185_v41 }
  0x9f   : > { %v281_v47 = vperm.slane %v188_v46, 1  ;;  %215 = vrot.lane.b32.xlu1 %v188_v46, %s1581_s27  ;;  %208 = vrot.lane.b32.xlu2 %v188_v46, %s1582_s16  ;;  %v292_v58 = vperm.slane %v188_v46, 2  ;;  %v270_v61 = vperm.slane %v188_v46, 0  ;;  %v303_v11 = vperm.slane %v188_v46, 3 }
  0xa1   : > { %v1763_v49 = vmul.f32 %v285_v48, %v281_v47  ;;  %v409_v47 = vpop.permute.xlu2 %408 }
  0xa5   : > { %v1766_v50 = vpop.permute.xlu0 %241  ;;  %v198_v51 = vpop.permute.xlu1 %197 }
  0xa6   : > { %v1772_v53 = vsel %vm199_vm1, %v196_v45, %v198_v51  ;;  %v201_v9 = vsel %vm199_vm1, %v198_v51, %v196_v45 }
  0xa7   : > { %2716 = vst [vmem:[#allocation6_spill] sm:$0xff] %v1772_v53  ;;  %551 = vrot.lane.b32.xlu1 %v1772_v53, %s1582_s16  ;;  %557 = vrot.lane.b32.xlu0 %v1772_v53, %s1581_s27  ;;  %v202_v54 = vsel %vm169_vm0, %v1772_v53, %v189_v52  ;;  %v1823_v18 = vsel %vm172_vm2, %v188_v46, %v201_v9  ;;  %v1418_v9 = vld [vmem:[%s2694_s1 + $0x94] sm:$0xf] }
  0xa8   : > { %206 = vrot.lane.b32.xlu2 %v202_v54, %s1582_s16  ;;  %v280_v55 = vperm.slane %v202_v54, 1  ;;  %v291_v59 = vperm.slane %v202_v54, 2  ;;  %v269_v60 = vperm.slane %v202_v54, 0  ;;  %v302_v10 = vperm.slane %v202_v54, 3  ;;  %2718 = vst [vmem:[#allocation8_spill] sm:$0xff] %v1823_v18 }
  0xaa   : > { %v1784_v57 = vmul.f32 %v285_v48, %v280_v55 }
  0xad   : > { %v296_v63 = vpop.permute.xlu0 %295  ;;  %v274_v0 = vpop.permute.xlu1 %273 }
  0xae   : > { %v1792_v2 = vmul.f32 %v296_v63, %v291_v59  ;;  %v1794_v4 = vmul.f32 %v296_v63, %v292_v58  ;;  %v1796_v5 = vmul.f32 %v274_v0, %v269_v60  ;;  %v1798_v6 = vmul.f32 %v274_v0, %v270_v61  ;;  %v1417_v59 = vld [vmem:[%s2694_s1 + $0x90] sm:$0xf]  ;;  %v1420_v61 = vld [vmem:[%s2694_s1 + $0x9c] sm:$0xf] }
  0xaf   : > { %636 = vperm.xlu1 %1507, %v1410_v62   ;;  %213 = vrot.lane.b32.xlu0 %v202_v54, %s1581_s27  ;;  %v1422_v62 = vld [vmem:[%s2694_s1 + $0xa4] sm:$0xf] }
  0xb0   : > { %647 = vperm.xlu2 %1505, %v1411_v1   ;;  %v451_v1 = vpop.permute.xlu2 %450 }
  0xb5   : > { %v1815_v14 = vpop.permute.xlu0 %333  ;;  %v307_v15 = vpop.permute.xlu1 %306 }
  0xb6   : > { %v1817_v16 = vmul.f32 %v307_v15, %v302_v10  ;;  %v1819_v17 = vmul.f32 %v307_v15, %v303_v11  ;;  %v1423_v10 = vld [vmem:[%s2694_s1 + $0xa8] sm:$0xf]  ;;  %v1425_v11 = vld [vmem:[%s2694_s1 + $0xb0] sm:$0xf]  ;;  %v1426_v15 = vld [vmem:[%s2694_s1 + $0xb4] sm:$0xf] }
  0xb7   : > { %674 = vperm.xlu1 %1507, %v1413_v12   ;;  %625 = vperm.xlu0 %1506, %v1409_v13   ;;  %v1421_v13 = vld [vmem:[%s2694_s1 + $0xa0] sm:$0xf] }
  0xb8   : > { %553 = vrot.lane.b32.xlu2 %v1823_v18, %s1582_s16  ;;  %v496_v12 = vpop.permute.xlu2 %495 }
  0xbd   : > { %v1830_v20 = vpop.permute.xlu1 %344  ;;  %v368_v21 = vpop.permute.xlu0 %367 }
  0xbf   : > { %559 = vrot.lane.b32.xlu1 %v1823_v18, %s1581_s27  ;;  %658 = vperm.xlu0 %1506, %v1412_v19   ;;  %v1424_v19 = vld [vmem:[%s2694_s1 + $0xac] sm:$0xf] }
  0xc0   : > { %685 = vperm.xlu2 %1505, %v1414_v22  }
  0xc5   : > { %v370_v31 = vpop.permute.xlu1 %369  ;;  %v381_v32 = vpop.permute.xlu0 %380 }
  0xc6   : > { %v371_v35 = vsel %vm210_vm3, %v368_v21, %v370_v31  ;;  %v372_v36 = vsel %vm210_vm3, %v370_v31, %v368_v21  ;;  %v382_v37 = vsel %vm217_vm4, %v379_v23, %v381_v32  ;;  %v383_v40 = vsel %vm217_vm4, %v381_v32, %v379_v23  ;;  %v1929_v21 = vpop.permute.xlu2 %533  ;;  %v1429_v31 = vld [vmem:[%s2694_s1 + $0xc0] sm:$0xf] }
  0xc7   : > { %v1876_v41 = vsel %vm1849_vm7, %v382_v37, %v372_v36  ;;  %v1880_v44 = vsel %vm1841_vm5, %v383_v40, %v371_v35  ;;  %v1884_v45 = vsel %vm1853_vm8, %v372_v36, %v382_v37  ;;  %v1888_v46 = vsel %vm1845_vm6, %v371_v35, %v383_v40  ;;  %707 = vperm.xlu1 %1507, %v1416_v30   ;;  %v1435_v40 = vld [vmem:[%s2694_s1 + $0xd8] sm:$0xf] }
  0xc8   : > { %v404_v48 = vperm.slane %v1876_v41, 1  ;;  %v405_v51 = vperm.slane %v1880_v44, 1  ;;  %696 = vperm.xlu0 %1506, %v1415_v33   ;;  %820 = vperm.xlu2 %1505, %v1419_v34   ;;  %v393_v55 = vperm.slane %v1876_v41, 0  ;;  %v394_v58 = vperm.slane %v1880_v44, 0  ;;  %v1432_v34 = vld [vmem:[%s2694_s1 + $0xcc] sm:$0xf] }
  0xca   : > { %v1892_v52 = vmul.f32 %v409_v47, %v404_v48  ;;  %v1894_v54 = vmul.f32 %v409_v47, %v405_v51 }
  0xcc   : > { %2727 = vst [vmem:[#allocation9_spill] sm:$0xff] %v1892_v52  ;;  %v540_v52 = vperm.slane %v1884_v45, 3 }
  0xcd   : > { %2728 = vst [vmem:[#allocation10_spill] sm:$0xff] %v1894_v54  ;;  %v398_v60 = vpop.permute.xlu1 %397  ;;  %v1931_v22 = vpop.permute.xlu0 %419  ;;  %v415_v54 = vperm.slane %v1876_v41, 2 }
  0xce   : > { %v1907_v63 = vmul.f32 %v398_v60, %v393_v55  ;;  %v1909_v0 = vmul.f32 %v398_v60, %v394_v58  ;;  %v1938_v25 = vpop.permute.xlu2 %576  ;;  %v1437_v55 = vld [vmem:[%s2694_s1 + $0xe0] sm:$0xf]  ;;  %v442_v58 = vperm.slane %v1658_v3, 0  ;;  %v487_v60 = vperm.slane %v1658_v3, 3 }
  0xcf   : > { %802 = vperm.xlu1 %1507, %v1417_v59   ;;  %2729 = vst [vmem:[#allocation11_spill] sm:$0xff] %v1938_v25  ;;  %v443_v59 = vperm.slane %v1658_v3, 4  ;;  %v507_v25 = vperm.slane %v1884_v45, 0 }
  0xd0   : > { %829 = vperm.xlu0 %1506, %v1420_v61   ;;  %854 = vperm.xlu2 %1505, %v1422_v62   ;;  %v488_v61 = vperm.slane %v1658_v3, 7  ;;  %v446_v62 = vperm.slane %v442_v58, 0  ;;  %v457_v58 = vperm.slane %v1658_v3, 1 }
  0xd5   : > { %v1933_v23 = vpop.permute.xlu1 %430  ;;  %v1940_v30 = vpop.permute.xlu0 %465 }
  0xd6   : > { %v1947_v33 = vpop.permute.xlu2 %609 }
  0xd7   : > { %811 = vperm.xlu1 %1507, %v1418_v9   ;;  %2730 = vst [vmem:[#allocation12_spill] sm:$0xff] %v1947_v33 }
  0xd8   : > { %865 = vperm.xlu0 %1506, %v1423_v10   ;;  %892 = vperm.xlu2 %1505, %v1425_v11   ;;  %v447_v11 = vperm.slane %v443_v59, 0  ;;  %v458_v59 = vperm.slane %v1658_v3, 5 }
  0xda   : > { %v462_v33 = vperm.slane %v458_v59, 1 }
  0xdd   : > { %v1945_v32 = vpop.permute.xlu1 %480  ;;  %v1952_v35 = vpop.permute.xlu0 %511 }
  0xdf   : > { %843 = vperm.xlu1 %1507, %v1421_v13   ;;  %v491_v13 = vperm.slane %v487_v60, 3 }
  0xe0   : > { %903 = vperm.xlu0 %1506, %v1426_v15   ;;  %v492_v15 = vperm.slane %v488_v61, 3  ;;  %v633_v61 = vperm.slane %v1823_v18, 1 }
  0xe5   : > { %v1954_v36 = vpop.permute.xlu1 %522  ;;  %v1961_v47 = vpop.permute.xlu0 %544 }
  0xe7   : > { %876 = vperm.xlu1 %1507, %v1424_v19   ;;  %v1440_v19 = vld [vmem:[%s2694_s1 + $0xec] sm:$0xf] }
  0xed   : > { %v1963_v48 = vpop.permute.xlu1 %598  ;;  %v1974_v9 = vpop.permute.xlu0 %587 }
  0xee   : > { %2731 = vst [vmem:[#allocation13_spill] sm:$0xff] %v1963_v48 }
  0xef   : > { %914 = vperm.xlu1 %1507, %v1427_v24   ;;  %2732 = vst [vmem:[#allocation14_spill] sm:$0xff] %v1974_v9  ;;  %v1981_v24 = vmul.f32 %v451_v1, %v446_v62  ;;  %v473_v62 = vperm.slane %v1658_v3, 6  ;;  %v1995_v9 = vmul.f32 %v496_v12, %v491_v13  ;;  %v426_v13 = vperm.slane %v1876_v41, 3 }
  0xf1   : > { %2733 = vst [vmem:[#allocation15_spill] sm:$0xff] %v1981_v24  ;;  %v530_v24 = vperm.slane %v1888_v46, 2  ;;  %v2028_v59 = vmul.f32 %v1933_v23, %v426_v13 }
  0xf2   : > { %2735 = vst [vmem:[#allocation17_spill] sm:$0xff] %v1995_v9  ;;  %v508_v9 = vperm.slane %v1888_v46, 0 }
  0xf7   : > { %957 = vperm.xlu1 %1507, %v1429_v31   ;;  %v643_v31 = vperm.slane %v1772_v53, 2 }
  0xf9   : > { %v1956_v37 = vpop.permute.xlu2 %208 }
  0xff   : > { %990 = vperm.xlu1 %1507, %v1432_v34   ;;  %v644_v34 = vperm.slane %v1823_v18, 2  ;;  %v518_v18 = vperm.slane %v1884_v45, 1 }
 0x102   : > { %v1965_v51 = vpop.permute.xlu2 %206 }
 0x107   : > { %1028 = vperm.xlu1 %1507, %v1435_v40   ;;  %v632_v40 = vperm.slane %v1772_v53, 1  ;;  %v519_v53 = vperm.slane %v1888_v46, 1 }
 0x10a   : > { %v648_v60 = vpop.permute.xlu2 %647 }
 0x10f   : > { %1055 = vperm.xlu1 %1507, %v1437_v55   ;;  %v1986_v55 = vmul.f32 %v451_v1, %v447_v11  ;;  %v1997_v1 = vmul.f32 %v496_v12, %v492_v15  ;;  %v427_v12 = vperm.slane %v1880_v44, 3  ;;  %v461_v15 = vperm.slane %v457_v58, 1 }
 0x110   : > { %v476_v11 = vperm.slane %v472_v7, 2  ;;  %v2022_v7 = vmul.f32 %v1931_v22, %v415_v54 }
 0x111   : > { %v1976_v10 = vpop.permute.xlu1 %215  ;;  %2734 = vst [vmem:[#allocation16_spill] sm:$0xff] %v1986_v55  ;;  %v529_v55 = vperm.slane %v1884_v45, 2  ;;  %v2034_v45 = vmul.f32 %v1940_v30, %v461_v15 }
 0x112   : > { %2736 = vst [vmem:[#allocation18_spill] sm:$0xff] %v1997_v1  ;;  %v477_v1 = vperm.slane %v473_v62, 2  ;;  %v2031_v62 = vmul.f32 %v1933_v23, %v427_v12  ;;  %v2052_v23 = vmul.f32 %v1954_v36, %v518_v18  ;;  %v212_v18 = vsel %vm210_vm3, %v1956_v37, %v1965_v51 }
 0x113   : > { %v2016_v41 = vmul.f32 %v1929_v21, %v529_v55  ;;  %v2055_v55 = vmul.f32 %v1954_v36, %v519_v53  ;;  %v2073_v53 = vmul.f32 %v648_v60, %v644_v34 }
 0x114   : > { %v2043_v54 = vmul.f32 %v1945_v32, %v477_v1 }
 0x115   : > { %2739 = vst [vmem:[#allocation21_spill] sm:$0xff] %v2073_v53 }
 0x117   : > { %1088 = vperm.xlu1 %1507, %v1440_v19   ;;  %v416_v19 = vperm.slane %v1880_v44, 2  ;;  %v2019_v44 = vmul.f32 %v1929_v21, %v530_v24  ;;  %v2040_v21 = vmul.f32 %v1945_v32, %v476_v11  ;;  %v2049_v24 = vmul.f32 %v1952_v35, %v508_v9  ;;  %v554_v32 = vpop.permute.xlu2 %553 }
 0x119   : > { %v552_v3 = vpop.permute.xlu1 %551  ;;  %v2005_v48 = vpop.permute.xlu0 %557  ;;  %v2025_v58 = vmul.f32 %v1931_v22, %v416_v19  ;;  %v2046_v22 = vmul.f32 %v1952_v35, %v507_v25  ;;  %v211_v25 = vsel %vm210_vm3, %v1965_v51, %v1956_v37  ;;  %v2071_v35 = vmul.f32 %v648_v60, %v643_v31 }
 0x11a   : > { %2737 = vst [vmem:[#allocation19_spill] sm:$0xff] %v2005_v48  ;;  %v541_v48 = vperm.slane %v1888_v46, 3  ;;  %v2037_v46 = vmul.f32 %v1940_v30, %v462_v33  ;;  %v2058_v30 = vmul.f32 %v1961_v47, %v540_v52 }
 0x11b   : > { %2738 = vst [vmem:[#allocation20_spill] sm:$0xff] %v2071_v35 }
 0x11c   : > { %v2061_v33 = vmul.f32 %v1961_v47, %v541_v48  ;;  %v2077_v47 = vsel %vm210_vm3, %v552_v3, %v554_v32  ;;  %v2081_v48 = vsel %vm210_vm3, %v554_v32, %v552_v3 }
 0x121   : > { %v637_v52 = vpop.permute.xlu1 %636  ;;  %v214_v36 = vpop.permute.xlu0 %213 }
 0x122   : > { %v218_v9 = vsel %vm217_vm4, %v214_v36, %v1976_v10  ;;  %v219_v37 = vsel %vm217_vm4, %v1976_v10, %v214_v36  ;;  %v2089_v51 = vmul.f32 %v637_v52, %v632_v40  ;;  %v2091_v31 = vmul.f32 %v637_v52, %v633_v61 }
 0x123   : > { %v220_v34 = vsel %vm1849_vm7, %v218_v9, %v212_v18  ;;  %v221_v60 = vsel %vm1841_vm5, %v219_v37, %v211_v25  ;;  %v222_v36 = vsel %vm1853_vm8, %v212_v18, %v218_v9  ;;  %v223_v53 = vsel %vm1845_vm6, %v211_v25, %v219_v37 }
 0x124   : > { %2740 = vst [vmem:[#allocation22_spill] sm:$0xff] %v2091_v31  ;;  %v228_v3 = vperm.slane %v220_v34, 0  ;;  %v229_v1 = vperm.slane %v221_v60, 0  ;;  %v237_v11 = vperm.slane %v220_v34, 1  ;;  %v238_v19 = vperm.slane %v221_v60, 1 }
 0x125   : > { %v246_v13 = vperm.slane %v220_v34, 2  ;;  %v247_v12 = vperm.slane %v221_v60, 2  ;;  %v255_v15 = vperm.slane %v220_v34, 3  ;;  %v256_v32 = vperm.slane %v221_v60, 3 }
 0x126   : > { %v235_v10 = vmul.f32 %v1750_v38, %v228_v3  ;;  %v236_v40 = vmul.f32 %v1750_v38, %v229_v1  ;;  %v244_v61 = vmul.f32 %v1766_v50, %v237_v11  ;;  %v245_v52 = vmul.f32 %v1766_v50, %v238_v19 }
 0x127   : > { %v262_v35 = vmul.f32 %v1754_v42, %v255_v15  ;;  %v263_v31 = vmul.f32 %v1754_v42, %v256_v32  ;;  %v253_v34 = vmul.f32 %v1752_v39, %v246_v13  ;;  %v254_v60 = vmul.f32 %v1752_v39, %v247_v12 }
 0x128   : > { %v278_v38 = vadd.f32 %v1796_v5, %v235_v10  ;;  %v279_v3 = vadd.f32 %v1798_v6, %v236_v40  ;;  %v289_v50 = vadd.f32 %v1784_v57, %v244_v61  ;;  %v290_v1 = vadd.f32 %v1763_v49, %v245_v52 }
 0x129   : > { %v311_v18 = vadd.f32 %v1817_v16, %v262_v35  ;;  %v312_v25 = vadd.f32 %v1819_v17, %v263_v31  ;;  %v2115_v9 = vpop.permute.xlu1 %674  ;;  %v318_v37 = vperm.slane %v222_v36, 0  ;;  %v319_v42 = vperm.slane %v223_v53, 0  ;;  %v626_v35 = vpop.permute.xlu0 %625 }
 0x12a   : > { %v329_v11 = vperm.slane %v222_v36, 1  ;;  %v330_v19 = vperm.slane %v223_v53, 1  ;;  %v340_v13 = vperm.slane %v222_v36, 2  ;;  %v341_v39 = vperm.slane %v223_v53, 2 }
 0x12b   : > { %v351_v12 = vperm.slane %v222_v36, 3  ;;  %v352_v5 = vperm.slane %v223_v53, 3  ;;  %v325_v6 = vmul.f32 %v1782_v56, %v318_v37  ;;  %v326_v57 = vmul.f32 %v1782_v56, %v319_v42 }
 0x12c   : > { %v336_v49 = vmul.f32 %v1815_v14, %v329_v11  ;;  %v337_v16 = vmul.f32 %v1815_v14, %v330_v19  ;;  %v300_v17 = vadd.f32 %v1792_v2, %v253_v34  ;;  %v301_v31 = vadd.f32 %v1794_v4, %v254_v60  ;;  %v2741_v34 = vld [vmem:[#allocation9_spill] sm:$0xff]  ;;  %v2742_v60 = vld [vmem:[#allocation10_spill] sm:$0xff] }
 0x12d   : > { %v358_v15 = vmul.f32 %v1805_v8, %v351_v12  ;;  %v359_v32 = vmul.f32 %v1805_v8, %v352_v5  ;;  %v327_v10 = vadd.f32 %v325_v6, %v278_v38  ;;  %v328_v40 = vadd.f32 %v326_v57, %v279_v3  ;;  %v2747_v12 = vld [vmem:[#allocation8_spill] sm:$0xff]  ;;  %v2749_v57 = vld [vmem:[#allocation19_spill] sm:$0xff] }
 0x12e   : > { %v338_v53 = vadd.f32 %v336_v49, %v289_v50  ;;  %v339_v61 = vadd.f32 %v337_v16, %v290_v1  ;;  %v347_v52 = vmul.f32 %v1830_v20, %v340_v13  ;;  %v348_v56 = vmul.f32 %v1830_v20, %v341_v39  ;;  %v2743_v1 = vld [vmem:[#allocation15_spill] sm:$0xff]  ;;  %v2744_v20 = vld [vmem:[#allocation16_spill] sm:$0xff] }
 0x12f   : > { %v360_v36 = vadd.f32 %v358_v15, %v311_v18  ;;  %v361_v37 = vadd.f32 %v359_v32, %v312_v25  ;;  %v402_v14 = vadd.f32 %v1907_v63, %v327_v10  ;;  %v403_v2 = vadd.f32 %v1909_v0, %v328_v40  ;;  %v2745_v0 = vld [vmem:[#allocation6_spill] sm:$0xff] }
 0x130   : > { %v413_v4 = vadd.f32 %v2741_v34, %v338_v53  ;;  %v414_v42 = vadd.f32 %v2742_v60, %v339_v61  ;;  %v349_v11 = vadd.f32 %v347_v52, %v300_v17  ;;  %v350_v8 = vadd.f32 %v348_v56, %v301_v31  ;;  %v2750_v53 = vld [vmem:[#allocation17_spill] sm:$0xff]  ;;  %v2751_v52 = vld [vmem:[#allocation18_spill] sm:$0xff] }
 0x131   : > { %v560_v38 = vpop.permute.xlu1 %559  ;;  %v435_v3 = vadd.f32 %v2028_v59, %v360_v36  ;;  %v436_v50 = vadd.f32 %v2031_v62, %v361_v37  ;;  %v455_v19 = vadd.f32 %v2743_v1, %v402_v14  ;;  %v456_v18 = vadd.f32 %v2744_v20, %v403_v2  ;;  %v659_v32 = vpop.permute.xlu0 %658  ;;  %v2752_v36 = vld [vmem:[#allocation11_spill] sm:$0xff] }
 0x132   : > { %v470_v25 = vadd.f32 %v2034_v45, %v413_v4  ;;  %v471_v63 = vadd.f32 %v2037_v46, %v414_v42  ;;  %v2746_v13 = vperm.slane %v2745_v0, 0  ;;  %v2748_v5 = vperm.slane %v2747_v12, 0 }
 0x133   : > { %v561_v59 = vsel %vm217_vm4, %v2749_v57, %v560_v38  ;;  %v562_v62 = vsel %vm217_vm4, %v560_v38, %v2749_v57  ;;  %v516_v49 = vadd.f32 %v2046_v22, %v455_v19  ;;  %v517_v45 = vadd.f32 %v2049_v24, %v456_v18  ;;  %v2754_v57 = vld [vmem:[#allocation12_spill] sm:$0xff] }
 0x134   : > { %v628_v39 = vmul.f32 %v626_v35, %v2746_v13  ;;  %v629_v6 = vmul.f32 %v626_v35, %v2748_v5  ;;  %v527_v46 = vadd.f32 %v2052_v23, %v470_v25  ;;  %v528_v16 = vadd.f32 %v2055_v55, %v471_v63  ;;  %v686_v63 = vpop.permute.xlu2 %685 }
 0x135   : > { %v563_v35 = vsel %vm1849_vm7, %v561_v59, %v2081_v48  ;;  %v564_v17 = vsel %vm1841_vm5, %v562_v62, %v2077_v47  ;;  %v565_v31 = vsel %vm1853_vm8, %v2081_v48, %v561_v59  ;;  %v566_v22 = vsel %vm1845_vm6, %v2077_v47, %v562_v62  ;;  %v2753_v48 = vld [vmem:[#allocation14_spill] sm:$0xff] }
 0x136   : > { %v572_v24 = vperm.slane %v563_v35, 0  ;;  %v573_v23 = vperm.slane %v564_v17, 0  ;;  %v583_v15 = vperm.slane %v563_v35, 1  ;;  %v584_v55 = vperm.slane %v564_v17, 1 }
 0x137   : > { %v605_v10 = vperm.slane %v563_v35, 3  ;;  %v606_v40 = vperm.slane %v564_v17, 3  ;;  %v500_v61 = vadd.f32 %v2750_v53, %v435_v3  ;;  %v501_v56 = vadd.f32 %v2751_v52, %v436_v50 }
 0x138   : > { %v579_v37 = vmul.f32 %v2752_v36, %v572_v24  ;;  %v580_v14 = vmul.f32 %v2752_v36, %v573_v23  ;;  %v590_v2 = vmul.f32 %v2753_v48, %v583_v15  ;;  %v591_v34 = vmul.f32 %v2753_v48, %v584_v55 }
 0x139   : > { %v670_v47 = vperm.slane %v565_v31, 0  ;;  %v671_v4 = vperm.slane %v566_v22, 0  ;;  %v681_v60 = vperm.slane %v565_v31, 1  ;;  %v682_v42 = vperm.slane %v566_v22, 1  ;;  %v708_v15 = vpop.permute.xlu1 %707 }
 0x13a   : > { %v581_v38 = vadd.f32 %v579_v37, %v516_v49  ;;  %v582_v1 = vadd.f32 %v580_v14, %v517_v45  ;;  %v594_v19 = vperm.slane %v563_v35, 2  ;;  %v595_v20 = vperm.slane %v564_v17, 2 }
 0x13b   : > { %v592_v18 = vadd.f32 %v590_v2, %v527_v46  ;;  %v593_v3 = vadd.f32 %v591_v34, %v528_v16  ;;  %v677_v50 = vmul.f32 %v2115_v9, %v670_v47  ;;  %v678_v25 = vmul.f32 %v2115_v9, %v671_v4  ;;  %v2758_v47 = vld [vmem:[#allocation22_spill] sm:$0xff] }
 0x13c   : > { %v549_v13 = vadd.f32 %v2058_v30, %v500_v61  ;;  %v550_v5 = vadd.f32 %v2061_v33, %v501_v56  ;;  %v612_v59 = vmul.f32 %v2754_v57, %v605_v10  ;;  %v613_v62 = vmul.f32 %v2754_v57, %v606_v40  ;;  %v2757_v10 = vld [vmem:[#allocation13_spill] sm:$0xff] }
 0x13d   : > { %v688_v24 = vmul.f32 %v686_v63, %v681_v60  ;;  %v689_v49 = vmul.f32 %v686_v63, %v682_v42  ;;  %v2755_v45 = vperm.slane %v2745_v0, 3  ;;  %v2756_v46 = vperm.slane %v2747_v12, 3  ;;  %v697_v0 = vpop.permute.xlu0 %696 }
 0x13e   : > { %v614_v17 = vadd.f32 %v612_v59, %v549_v13  ;;  %v615_v23 = vadd.f32 %v613_v62, %v550_v5  ;;  %v424_v9 = vadd.f32 %v2022_v7, %v349_v11  ;;  %v425_v30 = vadd.f32 %v2025_v58, %v350_v8 }
 0x13f   : > { %v661_v35 = vmul.f32 %v659_v32, %v2755_v45  ;;  %v662_v16 = vmul.f32 %v659_v32, %v2756_v46  ;;  %v703_v33 = vperm.slane %v565_v31, 3  ;;  %v704_v55 = vperm.slane %v566_v22, 3  ;;  %v1428_v46 = vld [vmem:[%s2694_s1 + $0xbc] sm:$0xf] }
 0x140   : > { %v601_v53 = vmul.f32 %v2757_v10, %v594_v19  ;;  %v602_v40 = vmul.f32 %v2757_v10, %v595_v20  ;;  %v485_v56 = vadd.f32 %v2040_v21, %v424_v9  ;;  %v486_v12 = vadd.f32 %v2043_v54, %v425_v30  ;;  %v2760_v19 = vld [vmem:[#allocation21_spill] sm:$0xff]  ;;  %v1433_v9 = vld [vmem:[%s2694_s1 + $0xd0] sm:$0xf]  ;;  %v1442_v30 = vld [vmem:[%s2694_s1 + $0xf4] sm:$0xf] }
 0x141   : > { %v663_v61 = vadd.f32 %v661_v35, %v614_v17  ;;  %v664_v52 = vadd.f32 %v662_v16, %v615_v23  ;;  %v692_v32 = vperm.slane %v565_v31, 2  ;;  %v693_v36 = vperm.slane %v566_v22, 2  ;;  %v1431_v35 = vld [vmem:[%s2694_s1 + $0xc8] sm:$0xf]  ;;  %v1434_v16 = vld [vmem:[%s2694_s1 + $0xd4] sm:$0xf] }
 0x142   : > { %v630_v37 = vadd.f32 %v628_v39, %v581_v38  ;;  %v631_v7 = vadd.f32 %v629_v6, %v582_v1  ;;  %v710_v11 = vmul.f32 %v708_v15, %v703_v33  ;;  %v711_v58 = vmul.f32 %v708_v15, %v704_v55  ;;  %v2759_v38 = vld [vmem:[#allocation20_spill] sm:$0xff]  ;;  %v1430_v17 = vld [vmem:[%s2694_s1 + $0xc4] sm:$0xf]  ;;  %v1439_v23 = vld [vmem:[%s2694_s1 + $0xe8] sm:$0xf] }
 0x143   : > { %v538_v8 = vadd.f32 %v2016_v41, %v485_v56  ;;  %v539_v14 = vadd.f32 %v2019_v44, %v486_v12  ;;  %v699_v48 = vmul.f32 %v697_v0, %v692_v32  ;;  %v700_v2 = vmul.f32 %v697_v0, %v693_v36  ;;  %v1436_v15 = vld [vmem:[%s2694_s1 + $0xdc] sm:$0xf]  ;;  %v1445_v33 = vld [vmem:[%s2694_s1 + $0x100] sm:$0xf]  ;;  %v1438_v55 = vld [vmem:[%s2694_s1 + $0xe4] sm:$0xf] }
 0x144   : > { %v641_v34 = vadd.f32 %v2089_v51, %v592_v18  ;;  %v642_v4 = vadd.f32 %v2758_v47, %v593_v3  ;;  %v679_v42 = vadd.f32 %v677_v50, %v630_v37  ;;  %v680_v54 = vadd.f32 %v678_v25, %v631_v7  ;;  %v1441_v10 = vld [vmem:[%s2694_s1 + $0xf0] sm:$0xf] }
 0x145   : > { %v603_v60 = vadd.f32 %v601_v53, %v538_v8  ;;  %v604_v21 = vadd.f32 %v602_v40, %v539_v14  ;;  %v712_v39 = vadd.f32 %v710_v11, %v663_v61  ;;  %v713_v6 = vadd.f32 %v711_v58, %v664_v52  ;;  %v1444_v53 = vld [vmem:[%s2694_s1 + $0xfc] sm:$0xf]  ;;  %v2241_v40 = vpop.permute.xlu2 %820  ;;  %v2243_v52 = vpop.permute.xlu0 %829 }
 0x146   : > { %v690_v31 = vadd.f32 %v688_v24, %v641_v34  ;;  %v691_v22 = vadd.f32 %v689_v49, %v642_v4  ;;  %v1583_v61 = vmov 256.0  }
 0x147   : > { %v652_v1 = vadd.f32 %v2759_v38, %v603_v60  ;;  %v653_v41 = vadd.f32 %v2760_v19, %v604_v21  ;;  %1508 = vrcp.f32 %v1583_v61 }
 0x148   : > { %v714_v20 = vadd.f32 %v690_v31, %v679_v42  ;;  %v715_v44 = vadd.f32 %v691_v22, %v680_v54 }
 0x149   : > { %v701_v63 = vadd.f32 %v699_v48, %v652_v1  ;;  %v702_v13 = vadd.f32 %v700_v2, %v653_v41 }
 0x14b   : > { %v716_v5 = vadd.f32 %v712_v39, %v701_v63  ;;  %v717_v51 = vadd.f32 %v713_v6, %v702_v13 }
 0x14d   : > { %v2191_v18 = vadd.f32 %v716_v5, %v714_v20  ;;  %v2193_v3 = vadd.f32 %v717_v51, %v715_v44  ;;  %v1509_v0 = vpop.eup %1508  ;;  %v2245_v56 = vpop.permute.xlu2 %854 }
 0x14e   : > { %v727_v12 = vmul.f32 256.0, %v1509_v0  ;;  %v2247_v32 = vpop.permute.xlu0 %865  ;;  %vm731_vm10 = vweird.f32 %v1509_v0 }
 0x14f   : > { %v721_v50 = vsel %vm720_vm9, %v2191_v18, 0.0  ;;  %v722_v25 = vsel %vm720_vm9, %v2193_v3, 0.0  ;;  %v734_v57 = vmul.f32 %v2191_v18, %v2191_v18  ;;  %v735_v59 = vmul.f32 %v2193_v3, %v2193_v3 }
 0x150   : > { %v723_v62 = vadd.f32 %v722_v25, %v721_v50  ;;  %v728_v36 = vsub.f32 1.0, %v727_v12 }
 0x151   : > { %v736_v24 = vsel %vm720_vm9, %v734_v57, 0.0  ;;  %v737_v49 = vsel %vm720_vm9, %v735_v59, 0.0 }
 0x152   : > { %724 = vadd.xlane.f32.xlu2 %v723_v62  ;;  %v738_v45 = vadd.f32 %v737_v49, %v736_v24  ;;  %v729_v37 = vmul.f32 %v1509_v0, %v728_v36  ;;  %v1447_v36 = vld [vmem:[%s2694_s1 + $0x108] sm:$0xf] }
 0x154   : > { %739 = vadd.xlane.f32.xlu0 %v738_v45  ;;  %v730_v58 = vadd.f32 %v1509_v0, %v729_v37  ;;  %v1448_v45 = vld [vmem:[%s2694_s1 + $0x10c] sm:$0xf] }
 0x155   : > { %v2249_v7 = vpop.permute.xlu2 %892 }
 0x156   : > { %v2251_v11 = vpop.permute.xlu0 %903  ;;  %v2253_v8 = vsel %vm731_vm10, %v1509_v0, %v730_v58 }
 0x157   : > { %2761 = vst [vmem:[#allocation9_spill] sm:$0xff] %v2253_v8 }
 0x168   : > { %979 = vperm.xlu0 %1506, %v1431_v35   ;;  %v2294_v35 = vpop.permute.xlu1 %802 }
 0x16a   : > { %925 = vperm.xlu2 %1505, %v1428_v46  }
 0x170   : > { %1017 = vperm.xlu0 %1506, %v1434_v16   ;;  %v2300_v46 = vpop.permute.xlu1 %811  ;;  %v1443_v16 = vld [vmem:[%s2694_s1 + $0xf8] sm:$0xf] }
 0x172   : > { %968 = vperm.xlu2 %1505, %v1430_v17  }
 0x178   : > { %1077 = vperm.xlu0 %1506, %v1439_v23   ;;  %v2305_v17 = vpop.permute.xlu1 %843  ;;  %v1446_v23 = vld [vmem:[%s2694_s1 + $0x104] sm:$0xf] }
 0x17a   : > { %1006 = vperm.xlu2 %1505, %v1433_v9  }
 0x180   : > { %1131 = vperm.xlu0 %1506, %v1442_v30   ;;  %v2310_v9 = vpop.permute.xlu1 %876 }
 0x182   : > { %1039 = vperm.xlu2 %1505, %v1436_v15  }
 0x188   : > { %1169 = vperm.xlu0 %1506, %v1445_v33   ;;  %v2314_v30 = vpop.permute.xlu1 %914 }
 0x18a   : > { %1066 = vperm.xlu2 %1505, %v1438_v55  }
 0x190   : > { %v2316_v15 = vpop.permute.xlu1 %957 }
 0x192   : > { %1120 = vperm.xlu2 %1505, %v1441_v10  }
 0x198   : > { %v2318_v33 = vpop.permute.xlu1 %990 }
 0x19a   : > { %1153 = vperm.xlu2 %1505, %v1444_v53  }
 0x1a0   : > { %v1029_v55 = vpop.permute.xlu1 %1028 }
 0x1a8   : > { %v2320_v10 = vpop.permute.xlu1 %1055 }
 0x1b0   : > { %v2322_v53 = vpop.permute.xlu1 %1088 }
 0x1c5   : > { %v725_v14 = vpop.xlane.xlu2 %724 }
 0x1c6   : > { %v733_v48 = vmul.f32 %v2253_v8, %v725_v14 }
 0x1c7   : > { %v740_v2 = vpop.xlane.xlu0 %739 }
 0x1c8   : > { %v741_v34 = vmul.f32 %v740_v2, %v2253_v8  ;;  %v742_v47 = vmul.f32 %v733_v48, %v733_v48  ;;  %v744_v19 = vsub.f32 %v2191_v18, %v733_v48  ;;  %v745_v41 = vsub.f32 %v2193_v3, %v733_v48 }
 0x1ca   : > { %v743_v4 = vsub.f32 %v741_v34, %v742_v47  ;;  %v1450_v47 = vld [vmem:[%s2694_s1 + $0x114] sm:$0xf] }
 0x1cc   : > { %v746_v60 = vadd.f32 1e-05, %v743_v4 }
 0x1cd   : > { %v2257_v21 = vpop.permute.xlu2 %925 }
 0x1ce   : > { %1510 = vrsqrt.f32 %v746_v60  ;;  %vm753_vm12 = vweird.f32 %v746_v60 }
 0x1d4   : > { %v1511_v42 = vpop.eup %1510 }
 0x1d5   : > { %v748_v54 = vmul.f32 %v1511_v42, %v746_v60  ;;  %vm754_vm11 = vweird.f32 %v1511_v42  ;;  %v2259_v6 = vpop.permute.xlu2 %968 }
 0x1d6   : > { %vm755_vm13 = vmor %vm753_vm12, %vm754_vm11 }
 0x1d7   : > { %v749_v31 = vmul.f32 %v1511_v42, %v748_v54  ;;  %v1449_v54 = vld [vmem:[%s2694_s1 + $0x110] sm:$0xf] }
 0x1d9   : > { %v750_v22 = vmul.f32 0.5, %v749_v31  ;;  %v1452_v31 = vld [vmem:[%s2694_s1 + $0x11c] sm:$0xf] }
 0x1da   : > { %v2261_v38 = vpop.permute.xlu0 %979 }
 0x1db   : > { %v751_v39 = vsub.f32 1.5, %v750_v22 }
 0x1dd   : > { %v752_v1 = vmul.f32 %v1511_v42, %v751_v39  ;;  %v1007_v18 = vpop.permute.xlu2 %1006 }
 0x1df   : > { %v756_v20 = vsel %vm755_vm13, %v1511_v42, %v752_v1  ;;  %v1451_v42 = vld [vmem:[%s2694_s1 + $0x118] sm:$0xf] }
 0x1e0   : > { %v757_v44 = vmul.f32 %v756_v20, %v744_v19  ;;  %v758_v63 = vmul.f32 %v756_v20, %v745_v41 }
 0x1e2   : > { %v2265_v13 = vmax.f32 %v757_v44, 0.0  ;;  %v2267_v5 = vmax.f32 %v758_v63, 0.0  ;;  %v1018_v3 = vpop.permute.xlu0 %1017 }
 0x1e4   : > { %v1002_v51 = vperm.slane %v2265_v13, 0  ;;  %v1003_v50 = vperm.slane %v2267_v5, 0  ;;  %v1013_v25 = vperm.slane %v2265_v13, 1  ;;  %v1014_v57 = vperm.slane %v2267_v5, 1  ;;  %938 = vrot.lane.b32.xlu2 %v2265_v13, %s1581_s27  ;;  %932 = vrot.lane.b32.xlu0 %v2265_v13, %s1582_s16 }
 0x1e5   : > { %761 = vrot.lane.b32.xlu1 %v2265_v13, %s1579_s4  ;;  %v1040_v39 = vpop.permute.xlu2 %1039 }
 0x1e6   : > { %v2279_v59 = vmul.f32 %v1007_v18, %v1002_v51  ;;  %v2281_v62 = vmul.f32 %v1007_v18, %v1003_v50  ;;  %v2283_v24 = vmul.f32 %v1018_v3, %v1013_v25  ;;  %v2285_v49 = vmul.f32 %v1018_v3, %v1014_v57 }
 0x1e7   : > { %v1035_v3 = vperm.slane %v2265_v13, 3 }
 0x1ea   : > { %v2377_v22 = vpop.permute.xlu0 %1077 }
 0x1ec   : > { %940 = vrot.lane.b32.xlu0 %v2267_v5, %s1581_s27 }
 0x1ed   : > { %763 = vrot.lane.b32.xlu1 %v2267_v5, %s1579_s4  ;;  %v2381_v19 = vpop.permute.xlu2 %1066 }
 0x1f2   : > { %v2379_v1 = vpop.permute.xlu0 %1131 }
 0x1f3   : > { %2763 = vst [vmem:[#allocation10_spill] sm:$0xff] %v2379_v1 }
 0x1f4   : > { %1202 = vperm.xlu0 %1506, %v1448_v45   ;;  %v1036_v45 = vperm.slane %v2267_v5, 3 }
 0x1f5   : > { %767 = vrot.lane.b32.xlu1 %v2265_v13, %s1580_s7  ;;  %v2383_v20 = vpop.permute.xlu2 %1120 }
 0x1f6   : > { %2764 = vst [vmem:[#allocation15_spill] sm:$0xff] %v2383_v20 }
 0x1fa   : > { %v1170_v41 = vpop.permute.xlu0 %1169  ;;  %v2783_v29 = vld [vmem:[#allocation10_spill] sm:$0xff] }
 0x1fd   : > { %769 = vrot.lane.b32.xlu1 %v2267_v5, %s1580_s7  ;;  %v2387_v51 = vpop.permute.xlu2 %1153  ;;  %v2782_v26 = vld [vmem:[#allocation15_spill] sm:$0xff]  ;;  %s1528_s7 = sshra.s32 %s1319_s21, 4  ;;  %s1529_s7 = int_to_ptr.hbm [resolvable:$true] %s1528_s7 }
 0x1fe   : > { %2766 = vst [vmem:[#allocation6_spill] sm:$0xff] %v2387_v51  ;;  %s1530_s22 = scalar_lea.hbm %s1529_s7, 8  ;;  %p1535_p0 = scmp.lt.s32.totalorder %s1529_s7, %s2695_s2 }
 0x1ff   : > { %p1531_p11 = scmp.ne.s32.totalorder %s1529_s7, %s1530_s22  ;;  %p1536_p1 = scmp.lt.s32.totalorder %s1534_s25, %s1530_s22 }
 0x201   : > { %p1532_p12 = pnand %p1531_p11, %p1637_p5  ;;  %p1537_p2 = por %p1536_p1, %p1535_p0 }
 0x203   : > { %p1533_p13 = pneg %p1532_p12 }
 0x205   : > { %1142 = vperm.xlu1 %1507, %v1443_v16   ;;  %v1025_v16 = vperm.slane %v2267_v5, 2  ;;  %p1538_p3 = pnand %p1537_p2, %p1533_p13 }
 0x20d   : > { %1180 = vperm.xlu1 %1507, %v1446_v23   ;;  %v1024_v23 = vperm.slane %v2265_v13, 2 }
 0x215   : > { %934 = vrot.lane.b32.xlu1 %v2267_v5, %s1582_s16 }
 0x23e   : > { %v939_v25 = vpop.permute.xlu2 %938 }
 0x256   : > { %v933_v44 = vpop.permute.xlu0 %932 }
 0x257   : > { %v762_v61 = vpop.permute.xlu1 %761 }
 0x25e   : > { %v941_v50 = vpop.permute.xlu0 %940 }
 0x25f   : > { %v764_v0 = vpop.permute.xlu1 %763  ;;  %v943_v13 = vsel %vm217_vm4, %v941_v50, %v939_v25 }
 0x260   : > { %v2326_v12 = vsel %vm169_vm0, %v762_v61, %v764_v0  ;;  %v766_v14 = vsel %vm169_vm0, %v764_v0, %v762_v61 }
 0x261   : > { %785 = vrot.lane.b32.xlu0 %v2326_v12, %s1581_s27  ;;  %779 = vrot.lane.b32.xlu2 %v2326_v12, %s1582_s16  ;;  %v840_v61 = vperm.slane %v2326_v12, 0  ;;  %v851_v0 = vperm.slane %v2326_v12, 1  ;;  %v862_v5 = vperm.slane %v2326_v12, 2  ;;  %v873_v4 = vperm.slane %v2326_v12, 3 }
 0x266   : > { %v1203_v18 = vpop.permute.xlu0 %1202 }
 0x267   : > { %v768_v37 = vpop.permute.xlu1 %767 }
 0x269   : > { %1191 = vperm.xlu2 %1505, %v1447_v36  }
 0x26f   : > { %v770_v58 = vpop.permute.xlu1 %769 }
 0x270   : > { %v2339_v48 = vsel %vm199_vm1, %v768_v37, %v770_v58  ;;  %v772_v34 = vsel %vm199_vm1, %v770_v58, %v768_v37  ;;  %v2397_v37 = vmul.f32 %v1040_v39, %v1035_v3  ;;  %v2399_v58 = vmul.f32 %v1040_v39, %v1036_v45 }
 0x271   : > { %1101 = vrot.lane.b32.xlu2 %v2339_v48, %s1581_s27  ;;  %1095 = vrot.lane.b32.xlu0 %v2339_v48, %s1582_s16  ;;  %v2348_v2 = vsel %vm169_vm0, %v2339_v48, %v766_v14  ;;  %v2360_v60 = vsel %vm172_vm2, %v2326_v12, %v772_v34  ;;  %v2401_v14 = vmul.f32 %v1029_v55, %v1025_v16 }
 0x272   : > { %777 = vrot.lane.b32.xlu1 %v2348_v2, %s1582_s16  ;;  %2767 = vst [vmem:[#allocation8_spill] sm:$0xff] %v2397_v37  ;;  %v2403_v34 = vmul.f32 %v1029_v55, %v1024_v23  ;;  %v1166_v39 = vperm.slane %v2360_v60, 0  ;;  %v2416_v55 = vmul.f32 %v2305_v17, %v840_v61  ;;  %v2419_v3 = vmul.f32 %v2245_v56, %v851_v0 }
 0x273   : > { %2768 = vst [vmem:[#allocation19_spill] sm:$0xff] %v2399_v58  ;;  %v839_v45 = vperm.slane %v2348_v2, 0  ;;  %v872_v12 = vperm.slane %v2348_v2, 3  ;;  %v1198_v61 = vperm.slane %v2339_v48, 3  ;;  %v1199_v8 = vperm.slane %v2360_v60, 3 }
 0x274   : > { %2769 = vst [vmem:[#allocation17_spill] sm:$0xff] %v2401_v14  ;;  %v1176_v0 = vperm.slane %v2339_v48, 1  ;;  %v1177_v51 = vperm.slane %v2360_v60, 1  ;;  %v2434_v58 = vmul.f32 %v2247_v32, %v862_v5  ;;  %v2437_v37 = vmul.f32 %v2310_v9, %v873_v4 }
 0x275   : > { %2770 = vst [vmem:[#allocation18_spill] sm:$0xff] %v2403_v34  ;;  %v2450_v5 = vmul.f32 %v2305_v17, %v839_v45 }
 0x277   : > { %v2385_v63 = vpop.permute.xlu1 %1142 }
 0x278   : > { %2765 = vst [vmem:[#allocation16_spill] sm:$0xff] %v2385_v63  ;;  %v1188_v63 = vperm.slane %v2360_v60, 2 }
 0x279   : > { %1229 = vperm.xlu2 %1505, %v1450_v47   ;;  %1103 = vrot.lane.b32.xlu0 %v2360_v60, %s1581_s27  ;;  %v942_v47 = vsel %vm217_vm4, %v939_v25, %v941_v50  ;;  %v850_v50 = vperm.slane %v2348_v2, 1  ;;  %v861_v25 = vperm.slane %v2348_v2, 2 }
 0x27a   : > { %783 = vrot.lane.b32.xlu1 %v2348_v2, %s1581_s27  ;;  %v1187_v2 = vperm.slane %v2339_v48, 2  ;;  %s134_s27 = sand.u32 1, %s1568_s10  }
 0x27b   : > { %v2453_v4 = vmul.f32 %v2245_v56, %v850_v50  ;;  %s1303_s13 = scalar_lea.sflag [#allocation3], %s134_s27 }
 0x27f   : > { %v1181_v57 = vpop.permute.xlu1 %1180 }
 0x281   : > { %1240 = vperm.xlu0 %1506, %v1451_v42  }
 0x282   : > { %1218 = vperm.xlu1 %1507, %v1449_v54  }
 0x287   : > { %v935_v42 = vpop.permute.xlu1 %934 }
 0x288   : > { %v936_v16 = vsel %vm210_vm3, %v933_v44, %v935_v42  ;;  %v937_v23 = vsel %vm210_vm3, %v935_v42, %v933_v44  ;;  %v2443_v44 = vmul.f32 %v1170_v41, %v1166_v39  ;;  %v2465_v39 = vmul.f32 %v1181_v57, %v1176_v0 }
 0x289   : > { %v944_v42 = vsel %vm1849_vm7, %v942_v47, %v937_v23  ;;  %v945_v20 = vsel %vm1841_vm5, %v943_v13, %v936_v16  ;;  %v946_v17 = vsel %vm1853_vm8, %v937_v23, %v942_v47  ;;  %v947_v56 = vsel %vm1845_vm6, %v936_v16, %v943_v13 }
 0x28a   : > { %1097 = vrot.lane.b32.xlu1 %v2360_v60, %s1582_s16  ;;  %2772 = vst [vmem:[#allocation14_spill] sm:$0xff] %v2443_v44  ;;  %v2459_v60 = vmul.f32 %v2310_v9, %v872_v12  ;;  %v2467_v44 = vmul.f32 %v1181_v57, %v1177_v51  ;;  %v954_v50 = vperm.slane %v945_v20, 0  ;;  %v964_v9 = vperm.slane %v944_v42, 1  ;;  %s1382_s16 = sshll.u32 %s134_s27, 3 }
 0x28b   : > { %2775 = vst [vmem:[#allocation22_spill] sm:$0xff] %v2465_v39  ;;  %v987_v0 = vperm.slane %v945_v20, 3  ;;  %v1052_v51 = vperm.slane %v947_v56, 0  ;;  %v1062_v57 = vperm.slane %v946_v17, 1  ;;  %v1074_v47 = vperm.slane %v947_v56, 2  ;;  %s136_s17 = scalar_lea.vmem [#allocation2], %s1382_s16 }
 0x28c   : > { %2776 = vst [vmem:[#allocation20_spill] sm:$0xff] %v2467_v44  ;;  %v1073_v44 = vperm.slane %v946_v17, 2  ;;  %v1084_v23 = vperm.slane %v946_v17, 3  ;;  %v1085_v39 = vperm.slane %v947_v56, 3  ;;  %v2479_v16 = vmul.f32 %v2316_v15, %v954_v50  ;;  %s1316_s4 = sshll.u32 %s136_s17, 4  ;;  %s1317_s4 = int_to_ptr.vmem [resolvable:$true] %s1316_s4 }
 0x292   : > { %1251 = vperm.xlu1 %1507, %v1452_v31   ;;  %v1165_v31 = vperm.slane %v2339_v48, 0  ;;  %v2456_v48 = vmul.f32 %v2247_v32, %v861_v25  ;;  %v953_v32 = vperm.slane %v944_v42, 0  ;;  %v965_v25 = vperm.slane %v945_v20, 1 }
 0x294   : > { %v2441_v1 = vmul.f32 %v1170_v41, %v1165_v31  ;;  %v2461_v41 = vmul.f32 %v1203_v18, %v1198_v61  ;;  %v2463_v31 = vmul.f32 %v1203_v18, %v1199_v8  ;;  %v975_v61 = vperm.slane %v944_v42, 2 }
 0x295   : > { %v976_v8 = vperm.slane %v945_v20, 2  ;;  %v986_v18 = vperm.slane %v944_v42, 3  ;;  %v2476_v13 = vmul.f32 %v2316_v15, %v953_v32  ;;  %v2485_v42 = vmul.f32 %v2259_v6, %v965_v25 }
 0x296   : > { %2771 = vst [vmem:[#allocation11_spill] sm:$0xff] %v2441_v1  ;;  %v2482_v1 = vmul.f32 %v2259_v6, %v964_v9  ;;  %v2488_v20 = vmul.f32 %v2261_v38, %v975_v61  ;;  %v2503_v32 = vmul.f32 %v2320_v10, %v1052_v51  ;;  %v2506_v6 = vmul.f32 %v2381_v19, %v1062_v57 }
 0x297   : > { %2773 = vst [vmem:[#allocation12_spill] sm:$0xff] %v2461_v41  ;;  %v1063_v41 = vperm.slane %v947_v56, 1  ;;  %v2491_v34 = vmul.f32 %v2261_v38, %v976_v8  ;;  %v2497_v56 = vmul.f32 %v2318_v33, %v987_v0  ;;  %v2512_v38 = vmul.f32 %v2377_v22, %v1073_v44 }
 0x298   : > { %2774 = vst [vmem:[#allocation13_spill] sm:$0xff] %v2463_v31  ;;  %v1051_v31 = vperm.slane %v946_v17, 0  ;;  %v2494_v17 = vmul.f32 %v2318_v33, %v986_v18  ;;  %v2515_v9 = vmul.f32 %v2377_v22, %v1074_v47  ;;  %v2518_v33 = vmul.f32 %v2322_v53, %v1084_v23 }
 0x299   : > { %v2509_v50 = vmul.f32 %v2381_v19, %v1063_v41 }
 0x29a   : > { %v2500_v15 = vmul.f32 %v2320_v10, %v1051_v31  ;;  %v2521_v31 = vmul.f32 %v2322_v53, %v1085_v39 }
 0x29c   : > { %2777 = vst [vmem:[#allocation21_spill] sm:$0xff] %v2521_v31 }
 0x2bb   : > { %v2395_v36 = vpop.permute.xlu2 %779 }
 0x2c3   : > { %v1192_v14 = vpop.permute.xlu2 %1191 }
 0x2c4   : > { %v2523_v25 = vmul.f32 %v1192_v14, %v1187_v2  ;;  %v2525_v61 = vmul.f32 %v1192_v14, %v1188_v63 }
 0x2c6   : > { %2778 = vst [vmem:[#allocation7_spill] sm:$0xff] %v2523_v25 }
 0x2c7   : > { %2779 = vst [vmem:[#allocation23_spill] sm:$0xff] %v2525_v61 }
 0x2cb   : > { %v1102_v8 = vpop.permute.xlu2 %1101 }
 0x2d3   : > { %v2411_v54 = vpop.permute.xlu0 %785 }
 0x2e3   : > { %v2473_v45 = vpop.permute.xlu0 %1095 }
 0x2e4   : > { %v778_v12 = vpop.permute.xlu1 %777 }
 0x2e5   : > { %v781_v19 = vsel %vm210_vm3, %v778_v12, %v2395_v36  ;;  %v782_v22 = vsel %vm210_vm3, %v2395_v36, %v778_v12 }
 0x2eb   : > { %v1104_v10 = vpop.permute.xlu0 %1103 }
 0x2ec   : > { %v784_v44 = vpop.permute.xlu1 %783  ;;  %v2535_v41 = vsel %vm217_vm4, %v1102_v8, %v1104_v10  ;;  %v2539_v53 = vsel %vm217_vm4, %v1104_v10, %v1102_v8 }
 0x2ed   : > { %v787_v63 = vsel %vm217_vm4, %v784_v44, %v2411_v54  ;;  %v788_v14 = vsel %vm217_vm4, %v2411_v54, %v784_v44 }
 0x2ee   : > { %v789_v36 = vsel %vm1849_vm7, %v787_v63, %v782_v22  ;;  %v790_v2 = vsel %vm1841_vm5, %v788_v14, %v781_v19  ;;  %v791_v39 = vsel %vm1853_vm8, %v782_v22, %v787_v63  ;;  %v792_v12 = vsel %vm1845_vm6, %v781_v19, %v788_v14 }
 0x2ef   : > { %v798_v18 = vperm.slane %v789_v36, 0  ;;  %v799_v0 = vperm.slane %v790_v2, 0  ;;  %v807_v51 = vperm.slane %v789_v36, 1  ;;  %v808_v57 = vperm.slane %v790_v2, 1 }
 0x2f0   : > { %v816_v47 = vperm.slane %v789_v36, 2  ;;  %v817_v23 = vperm.slane %v790_v2, 2  ;;  %v825_v10 = vperm.slane %v789_v36, 3  ;;  %v826_v54 = vperm.slane %v790_v2, 3 }
 0x2f1   : > { %v805_v8 = vmul.f32 %v2294_v35, %v798_v18  ;;  %v806_v44 = vmul.f32 %v2294_v35, %v799_v0  ;;  %v814_v61 = vmul.f32 %v2300_v46, %v807_v51  ;;  %v815_v25 = vmul.f32 %v2300_v46, %v808_v57 }
 0x2f2   : > { %v823_v22 = vmul.f32 %v2241_v40, %v816_v47  ;;  %v824_v19 = vmul.f32 %v2241_v40, %v817_v23  ;;  %v832_v63 = vmul.f32 %v2243_v52, %v825_v10  ;;  %v833_v14 = vmul.f32 %v2243_v52, %v826_v54 }
 0x2f3   : > { %v848_v31 = vadd.f32 %v2450_v5, %v805_v8  ;;  %v849_v36 = vadd.f32 %v2416_v55, %v806_v44  ;;  %v859_v2 = vadd.f32 %v2453_v4, %v814_v61  ;;  %v860_v35 = vadd.f32 %v2419_v3, %v815_v25 }
 0x2f4   : > { %v870_v18 = vadd.f32 %v2456_v48, %v823_v22  ;;  %v871_v46 = vadd.f32 %v2434_v58, %v824_v19  ;;  %v881_v0 = vadd.f32 %v2459_v60, %v832_v63  ;;  %v882_v40 = vadd.f32 %v2437_v37, %v833_v14  ;;  %v2571_v51 = vpop.permute.xlu1 %1218 }
 0x2f5   : > { %v888_v57 = vperm.slane %v791_v39, 0  ;;  %v889_v52 = vperm.slane %v792_v12, 0  ;;  %v899_v47 = vperm.slane %v791_v39, 1  ;;  %v900_v5 = vperm.slane %v792_v12, 1 }
 0x2f6   : > { %v910_v23 = vperm.slane %v791_v39, 2  ;;  %v911_v55 = vperm.slane %v792_v12, 2  ;;  %v921_v10 = vperm.slane %v791_v39, 3  ;;  %v922_v4 = vperm.slane %v792_v12, 3 }
 0x2f7   : > { %v895_v3 = vmul.f32 %v2249_v7, %v888_v57  ;;  %v896_v48 = vmul.f32 %v2249_v7, %v889_v52  ;;  %v906_v58 = vmul.f32 %v2251_v11, %v899_v47  ;;  %v907_v60 = vmul.f32 %v2251_v11, %v900_v5 }
 0x2f8   : > { %v917_v37 = vmul.f32 %v2314_v30, %v910_v23  ;;  %v918_v25 = vmul.f32 %v2314_v30, %v911_v55  ;;  %v928_v61 = vmul.f32 %v2257_v21, %v921_v10  ;;  %v929_v54 = vmul.f32 %v2257_v21, %v922_v4  ;;  %v2784_v4 = vld [vmem:[#allocation16_spill] sm:$0xff] }
 0x2f9   : > { %v897_v8 = vadd.f32 %v895_v3, %v848_v31  ;;  %v898_v44 = vadd.f32 %v896_v48, %v849_v36  ;;  %v908_v39 = vadd.f32 %v906_v58, %v859_v2  ;;  %v909_v12 = vadd.f32 %v907_v60, %v860_v35 }
 0x2fa   : > { %v919_v22 = vadd.f32 %v917_v37, %v870_v18  ;;  %v920_v19 = vadd.f32 %v918_v25, %v871_v46  ;;  %v930_v63 = vadd.f32 %v928_v61, %v881_v0  ;;  %v931_v7 = vadd.f32 %v929_v54, %v882_v40 }
 0x2fb   : > { %v962_v14 = vadd.f32 %v2476_v13, %v897_v8  ;;  %v963_v11 = vadd.f32 %v2479_v16, %v898_v44  ;;  %v973_v57 = vadd.f32 %v2482_v1, %v908_v39  ;;  %v974_v30 = vadd.f32 %v2485_v42, %v909_v12  ;;  %v2780_v42 = vld [vmem:[#allocation18_spill] sm:$0xff]  ;;  %v1230_v39 = vpop.permute.xlu2 %1229 }
 0x2fc   : > { %v984_v52 = vadd.f32 %v2488_v20, %v919_v22  ;;  %v985_v21 = vadd.f32 %v2491_v34, %v920_v19  ;;  %v1098_v31 = vpop.permute.xlu1 %1097  ;;  %v995_v36 = vadd.f32 %v2494_v17, %v930_v63  ;;  %v996_v2 = vadd.f32 %v2497_v56, %v931_v7  ;;  %v2781_v17 = vld [vmem:[#allocation17_spill] sm:$0xff]  ;;  %v2785_v19 = vld [vmem:[#allocation8_spill] sm:$0xff]  ;;  %v2786_v7 = vld [vmem:[#allocation19_spill] sm:$0xff] }
 0x2fd   : > { %v1011_v35 = vadd.f32 %v2279_v59, %v962_v14  ;;  %v1012_v18 = vadd.f32 %v2281_v62, %v963_v11  ;;  %v1022_v13 = vadd.f32 %v2283_v24, %v973_v57  ;;  %v1023_v16 = vadd.f32 %v2285_v49, %v974_v30 }
 0x2fe   : > { %v1099_v1 = vsel %vm210_vm3, %v2473_v45, %v1098_v31  ;;  %v1100_v34 = vsel %vm210_vm3, %v1098_v31, %v2473_v45  ;;  %v1033_v20 = vadd.f32 %v2780_v42, %v984_v52  ;;  %v1034_v56 = vadd.f32 %v2781_v17, %v985_v21  ;;  %v2787_v21 = vld [vmem:[#allocation21_spill] sm:$0xff]  ;;  %v2790_v42 = vld [vmem:[#allocation14_spill] sm:$0xff] }
 0x2ff   : > { %v1060_v59 = vadd.f32 %v2500_v15, %v1011_v35  ;;  %v1061_v62 = vadd.f32 %v2503_v32, %v1012_v18  ;;  %v1071_v24 = vadd.f32 %v2506_v6, %v1022_v13  ;;  %v1072_v49 = vadd.f32 %v2509_v50, %v1023_v16  ;;  %v2788_v35 = vld [vmem:[#allocation6_spill] sm:$0xff] }
 0x300   : > { %v1107_v46 = vsel %vm1849_vm7, %v2535_v41, %v1100_v34  ;;  %v1108_v43 = vsel %vm1841_vm5, %v2539_v53, %v1099_v1  ;;  %v2614_v45 = vsel %vm1853_vm8, %v1100_v34, %v2535_v41  ;;  %v2619_v15 = vsel %vm1845_vm6, %v1099_v1, %v2539_v53  ;;  %v2789_v34 = vld [vmem:[#allocation11_spill] sm:$0xff] }
 0x301   : > { %v1116_v32 = vperm.slane %v1107_v46, 0  ;;  %v1117_v6 = vperm.slane %v1108_v43, 0  ;;  %v1127_v50 = vperm.slane %v1107_v46, 1  ;;  %v1128_v0 = vperm.slane %v1108_v43, 1 }
 0x302   : > { %v1138_v28 = vperm.slane %v1107_v46, 2  ;;  %v1139_v40 = vperm.slane %v1108_v43, 2  ;;  %v1149_v47 = vperm.slane %v1107_v46, 3  ;;  %v1150_v5 = vperm.slane %v1108_v43, 3 }
 0x303   : > { %v1123_v23 = vmul.f32 %v2782_v26, %v1116_v32  ;;  %v1124_v55 = vmul.f32 %v2782_v26, %v1117_v6  ;;  %v1134_v41 = vmul.f32 %v2783_v29, %v1127_v50  ;;  %v1135_v10 = vmul.f32 %v2783_v29, %v1128_v0  ;;  %v1241_v32 = vpop.permute.xlu0 %1240  ;;  %v2795_v50 = vld [vmem:[#allocation12_spill] sm:$0xff] }
 0x304   : > { %v1145_v27 = vmul.f32 %v2784_v4, %v1138_v28  ;;  %v1146_v53 = vmul.f32 %v2784_v4, %v1139_v40  ;;  %v1214_v3 = vperm.slane %v2614_v45, 0  ;;  %v1215_v48 = vperm.slane %v2619_v15, 0  ;;  %v1252_v6 = vpop.permute.xlu1 %1251  ;;  %v2796_v28 = vld [vmem:[#allocation13_spill] sm:$0xff] }
 0x305   : > { %v1125_v58 = vadd.f32 %v1123_v23, %v1060_v59  ;;  %v1126_v60 = vadd.f32 %v1124_v55, %v1061_v62  ;;  %v1136_v37 = vadd.f32 %v1134_v41, %v1071_v24  ;;  %v1137_v25 = vadd.f32 %v1135_v10, %v1072_v49  ;;  %v2791_v62 = vld [vmem:[#allocation22_spill] sm:$0xff]  ;;  %v2794_v24 = vld [vmem:[#allocation23_spill] sm:$0xff] }
 0x306   : > { %v1221_v61 = vmul.f32 %v2571_v51, %v1214_v3  ;;  %v1222_v54 = vmul.f32 %v2571_v51, %v1215_v48  ;;  %v1225_v8 = vperm.slane %v2614_v45, 1  ;;  %v1226_v44 = vperm.slane %v2619_v15, 1 }
 0x307   : > { %v1236_v12 = vperm.slane %v2614_v45, 2  ;;  %v1237_v22 = vperm.slane %v2619_v15, 2  ;;  %v1044_v63 = vadd.f32 %v2785_v19, %v995_v36  ;;  %v1045_v14 = vadd.f32 %v2786_v7, %v996_v2 }
 0x308   : > { %v1232_v11 = vmul.f32 %v1230_v39, %v1225_v8  ;;  %v1233_v57 = vmul.f32 %v1230_v39, %v1226_v44  ;;  %v1082_v30 = vadd.f32 %v2512_v38, %v1033_v20  ;;  %v1083_v52 = vadd.f32 %v2515_v9, %v1034_v56  ;;  %v2792_v20 = vld [vmem:[#allocation20_spill] sm:$0xff]  ;;  %v2793_v56 = vld [vmem:[#allocation7_spill] sm:$0xff] }
 0x309   : > { %v1093_v51 = vadd.f32 %v2518_v33, %v1044_v63  ;;  %v1094_v31 = vadd.f32 %v2787_v21, %v1045_v14  ;;  %v1156_v18 = vmul.f32 %v2788_v35, %v1149_v47  ;;  %v1157_v13 = vmul.f32 %v2788_v35, %v1150_v5  ;;  %v2797_v63 = vld [vmem:[#allocation9_spill] sm:$0xff] }
 0x30a   : > { %v1147_v16 = vadd.f32 %v1145_v27, %v1082_v30  ;;  %v1148_v1 = vadd.f32 %v1146_v53, %v1083_v52  ;;  %v1174_v36 = vadd.f32 %v2789_v34, %v1125_v58  ;;  %v1175_v2 = vadd.f32 %v2790_v42, %v1126_v60 }
 0x30b   : > { %v1158_v17 = vadd.f32 %v1156_v18, %v1093_v51  ;;  %v1159_v59 = vadd.f32 %v1157_v13, %v1094_v31  ;;  %v1185_v38 = vadd.f32 %v2791_v62, %v1136_v37  ;;  %v1186_v9 = vadd.f32 %v2792_v20, %v1137_v25 }
 0x30c   : > { %v1196_v33 = vadd.f32 %v2793_v56, %v1147_v16  ;;  %v1197_v49 = vadd.f32 %v2794_v24, %v1148_v1  ;;  %v1223_v46 = vadd.f32 %v1221_v61, %v1174_v36  ;;  %v1224_v43 = vadd.f32 %v1222_v54, %v1175_v2 }
 0x30d   : > { %v1207_v0 = vadd.f32 %v2795_v50, %v1158_v17  ;;  %v1208_v40 = vadd.f32 %v2796_v28, %v1159_v59  ;;  %v1234_v47 = vadd.f32 %v1232_v11, %v1185_v38  ;;  %v1235_v5 = vadd.f32 %v1233_v57, %v1186_v9  ;;  %v2798_v59 = vld [vmem:[#allocation5_spill] sm:$0xff] }
 0x30e   : > { %v1243_v26 = vmul.f32 %v1241_v32, %v1236_v12  ;;  %v1244_v23 = vmul.f32 %v1241_v32, %v1237_v22  ;;  %v1247_v55 = vperm.slane %v2614_v45, 3  ;;  %v1248_v29 = vperm.slane %v2619_v15, 3 }
 0x30f   : > { %v1258_v41 = vadd.f32 %v1234_v47, %v1223_v46  ;;  %v1259_v10 = vadd.f32 %v1235_v5, %v1224_v43 }
 0x310   : > { %v1245_v4 = vadd.f32 %v1243_v26, %v1196_v33  ;;  %v1246_v27 = vadd.f32 %v1244_v23, %v1197_v49  ;;  %v1254_v53 = vmul.f32 %v1252_v6, %v1247_v55  ;;  %v1255_v3 = vmul.f32 %v1252_v6, %v1248_v29 }
 0x312   : > { %v1256_v48 = vadd.f32 %v1254_v53, %v1207_v0  ;;  %v1257_v58 = vadd.f32 %v1255_v3, %v1208_v40 }
 0x314   : > { %v1260_v60 = vadd.f32 %v1256_v48, %v1245_v4  ;;  %v1261_v37 = vadd.f32 %v1257_v58, %v1246_v27 }
 0x316   : > { %v1262_v25 = vadd.f32 %v1260_v60, %v1258_v41  ;;  %v1263_v61 = vadd.f32 %v1261_v37, %v1259_v10 }
 0x318   : > { %v1264_v54 = vsel %vm720_vm9, %v1262_v25, 0.0  ;;  %v1265_v8 = vsel %vm720_vm9, %v1263_v61, 0.0  ;;  %v1270_v44 = vmul.f32 %v1262_v25, %v1262_v25  ;;  %v1271_v45 = vmul.f32 %v1263_v61, %v1263_v61 }
 0x319   : > { %v1266_v39 = vadd.f32 %v1265_v8, %v1264_v54 }
 0x31a   : > { %v1272_v15 = vsel %vm720_vm9, %v1270_v44, 0.0  ;;  %v1273_v12 = vsel %vm720_vm9, %v1271_v45, 0.0 }
 0x31b   : > { %1267 = vadd.xlane.f32.xlu2 %v1266_v39  ;;  %v1274_v22 = vadd.f32 %v1273_v12, %v1272_v15 }
 0x31d   : > { %1275 = vadd.xlane.f32.xlu0 %v1274_v22 }
 0x38e   : > { %v1268_v19 = vpop.xlane.xlu2 %1267 }
 0x38f   : > { %v1269_v7 = vmul.f32 %v1268_v19, %v2797_v63 }
 0x390   : > { %v1276_v14 = vpop.xlane.xlu0 %1275 }
 0x391   : > { %v1277_v11 = vmul.f32 %v1276_v14, %v2797_v63  ;;  %v1278_v57 = vmul.f32 %v1269_v7, %v1269_v7  ;;  %v1281_v16 = vsub.f32 %v1263_v61, %v1269_v7  ;;  %v1280_v34 = vsub.f32 %v1262_v25, %v1269_v7 }
 0x393   : > { %v1279_v30 = vsub.f32 %v1277_v11, %v1278_v57 }
 0x395   : > { %v1282_v52 = vadd.f32 1e-05, %v1279_v30 }
 0x397   : > { %1512 = vrsqrt.f32 %v1282_v52  ;;  %vm1289_vm15 = vweird.f32 %v1282_v52 }
 0x39d   : > { %v1513_v51 = vpop.eup %1512 }
 0x39e   : > { %v1284_v21 = vmul.f32 %v1513_v51, %v1282_v52  ;;  %vm1290_vm14 = vweird.f32 %v1513_v51 }
 0x39f   : > { %vm1291_vm0 = vmor %vm1289_vm15, %vm1290_vm14 }
 0x3a0   : > { %v1285_v31 = vmul.f32 %v1513_v51, %v1284_v21 }
 0x3a2   : > { %v1286_v35 = vmul.f32 0.5, %v1285_v31 }
 0x3a4   : > { %v1287_v18 = vsub.f32 1.5, %v1286_v35 }
 0x3a6   : > { %v1288_v13 = vmul.f32 %v1513_v51, %v1287_v18 }
 0x3a8   : > { %v1292_v1 = vsel %vm1291_vm0, %v1513_v51, %v1288_v13 }
 0x3a9   : > { %v1294_v36 = vmul.f32 %v1292_v1, %v1281_v16  ;;  %v1293_v42 = vmul.f32 %v1292_v1, %v1280_v34 }
 0x3ab   : > { %v1297_v2 = vrot.slane %v1294_v36, 4 }
 0x3ad   : > { %v1298_v17 = vsel %vm720_vm9, %v1293_v42, %v1297_v2 }
 0x3ae   : > { %v1300_v62 = vadd.f32 %v1298_v17, %v2798_v59 }
 0x3b0   : > { %1301 = vst [vmem:[%s136_s17] sm:$0xff] %v1300_v62 }
 0x3b1   : > { %1541 = shalt.err (!%p1538_p3)
}
 0x3b2   : > { %1460 = dma.vmem_to_hbm [thread:$0]  (%p1637_p5), %s1317_s4, 128, %s1319_s21, %s1303_s13  }
 0x3b3 PF: > { %p1466_p4 = scmp.ge.s32.totalorder %s1576_s12, 2  ;;  %s1330_s29 = sand.u32 1, %s1564_s9  }
 0x3b4   : > { %s1331_s30 = scalar_lea.sflag [#allocation3], %s1330_s29 }
 0x3b5   : > { %p1463_p7 = pnand %p1466_p4, %p1641_p6 }
 0x3b7   : > { %p1464_p8 = pneg %p1463_p7 }
 0x3b9   : > { %1559 = dma.done.wait (%p1464_p8), %s1331_s30, 128  }
 0x3ba   : > { %1561 = vsyncadd (%p1464_p8), %s1331_s30, 4294967168  ;;  %p12_p9 = scmp.ge.s32.totalorder %s1624_s15, 4   ;;  %s2799_s9 = smov %s1568_s10 }
 0x3bb   : > { %s2800_s10 = smov %s1572_s11  ;;  %s2801_s11 = smov %s1635_s18 }
 0x3bc   : > { %s2802_s12 = smov %s1624_s15  ;;  %14 = sbr.rel (!%p12_p9) target bundleno = 3 (0x3), region = 80 }
 0x3c1   :  { %1337 = vsyncpa [#allocation3], 1 }
 0x3c2   :  { %1339 = vsyncpa [#allocation3 + $0x1], 1 }

</bundles_post_ra>
